<compile_context>
chip_gen: v5e
topology: v5e:2x2
jax: 0.10.0
libtpu: 0.0.40
codegen_flags: <defaults>
</compile_context>

<pallas_src>
import functools

import jax
import jax.numpy as jnp
from jax.experimental import pallas as pl
from jax.experimental.pallas import tpu as pltpu


_VMEM_LIMIT = 32 * 1024 * 1024  # safe on v5e/v6e/v7x


# ----------------------------------------------------------------------------
# Tiling helpers
# ----------------------------------------------------------------------------

def _pick_m_tile(m):
    """Row-tile size and padded row count (never fall back to one giant block)."""
    for tm in (512, 256, 128):
        if m % tm == 0:
            return tm, m
    tm = 128 if m >= 128 else max(8, ((m + 7) // 8) * 8)
    mp = ((m + tm - 1) // tm) * tm
    return tm, mp


def _pick_n_tile(n):
    """Output-channel tile: 128-lane dense when possible, else full extent."""
    if n % 128 == 0:
        return 256 if n % 256 == 0 else 128
    return n


def _pad_rows(a, mp):
    m = a.shape[0]
    if m == mp:
        return a
    return jnp.pad(a, ((0, mp - m), (0, 0)))


# ----------------------------------------------------------------------------
# Pallas kernels
# ----------------------------------------------------------------------------

def _gemm_bias_kernel(a_ref, w_ref, b_ref, o_ref, *, relu):
    """out = relu?(A @ W + shift)  — 1x1 conv with BN scale folded into W."""
    y = jnp.dot(a_ref[...], w_ref[...], preferred_element_type=jnp.float32)
    y = y + b_ref[...]
    if relu:
        y = jnp.maximum(y, 0.0)
    o_ref[...] = y.astype(o_ref.dtype)


def _gemm_bias_add_relu_kernel(a_ref, w_ref, b_ref, r_ref, o_ref):
    """out = relu(A @ W + shift + residual)  — conv3+bn3, identity shortcut."""
    y = jnp.dot(a_ref[...], w_ref[...], preferred_element_type=jnp.float32)
    y = y + b_ref[...] + r_ref[...].astype(jnp.float32)
    o_ref[...] = jnp.maximum(y, 0.0).astype(o_ref.dtype)


def _gemm_dual_bias_relu_kernel(a_ref, w_ref, b_ref, x_ref, ws_ref, bs_ref, o_ref):
    """out = relu(A @ W + b  +  X @ Ws + bs) — conv3+bn3 fused with projection shortcut."""
    y = jnp.dot(a_ref[...], w_ref[...], preferred_element_type=jnp.float32) + b_ref[...]
    r = jnp.dot(x_ref[...], ws_ref[...], preferred_element_type=jnp.float32) + bs_ref[...]
    o_ref[...] = jnp.maximum(y + r, 0.0).astype(o_ref.dtype)


def _conv3x3_bn_relu_kernel(ys_ref, w_ref, b_ref, o_ref, *, stride, ho, wo):
    """3x3 conv (stride, pad=1) + folded BN + ReLU.

    ys_ref: (s, Hq, s, Wq, Cin)  phase-decomposed, padded input for one image.
    w_ref : (3, 3, Cin, Cout_tile)  BN-scale-folded weights (bf16).
    All 9 tap windows are static slices; taps accumulate in f32 in-register.
    """
    c_out = o_ref.shape[-1]
    c_in = ys_ref.shape[-1]
    acc = jnp.zeros((ho * wo, c_out), jnp.float32)
    for kh in range(3):
        for kw in range(3):
            ph, dh = kh % stride, kh // stride
            pw, dw = kw % stride, kw // stride
            a = ys_ref[ph, dh:dh + ho, pw, dw:dw + wo, :]
            a = a.reshape(ho * wo, c_in)
            acc = acc + jnp.dot(a, w_ref[kh, kw],
                                preferred_element_type=jnp.float32)
    y = jnp.maximum(acc + b_ref[...], 0.0)
    o_ref[...] = y.reshape(ho, wo, c_out).astype(o_ref.dtype)


# ----------------------------------------------------------------------------
# pallas_call wrappers
# ----------------------------------------------------------------------------

def gemm_bias(a, w, b, *, relu, out_dtype):
    m, k = a.shape
    n = w.shape[1]
    tm, mp = _pick_m_tile(m)
    tn = _pick_n_tile(n)
    a = _pad_rows(a, mp)
    out = pl.pallas_call(
        functools.partial(_gemm_bias_kernel, relu=relu),
        out_shape=jax.ShapeDtypeStruct((mp, n), out_dtype),
        grid=(mp // tm, n // tn),
        in_specs=[
            pl.BlockSpec((tm, k), lambda i, j: (i, 0)),
            pl.BlockSpec((k, tn), lambda i, j: (0, j)),
            pl.BlockSpec((1, tn), lambda i, j: (0, j)),
        ],
        out_specs=pl.BlockSpec((tm, tn), lambda i, j: (i, j)),
        compiler_params=pltpu.CompilerParams(
            dimension_semantics=("parallel", "parallel"),
            vmem_limit_bytes=_VMEM_LIMIT),
    )(a, w, b)
    return out[:m] if mp != m else out


def gemm_bias_add_relu(a, w, b, r, *, out_dtype):
    m, k = a.shape
    n = w.shape[1]
    tm, mp = _pick_m_tile(m)
    tn = _pick_n_tile(n)
    a = _pad_rows(a, mp)
    r = _pad_rows(r, mp)
    out = pl.pallas_call(
        _gemm_bias_add_relu_kernel,
        out_shape=jax.ShapeDtypeStruct((mp, n), out_dtype),
        grid=(mp // tm, n // tn),
        in_specs=[
            pl.BlockSpec((tm, k), lambda i, j: (i, 0)),
            pl.BlockSpec((k, tn), lambda i, j: (0, j)),
            pl.BlockSpec((1, tn), lambda i, j: (0, j)),
            pl.BlockSpec((tm, tn), lambda i, j: (i, j)),
        ],
        out_specs=pl.BlockSpec((tm, tn), lambda i, j: (i, j)),
        compiler_params=pltpu.CompilerParams(
            dimension_semantics=("parallel", "parallel"),
            vmem_limit_bytes=_VMEM_LIMIT),
    )(a, w, b, r)
    return out[:m] if mp != m else out


def gemm_dual_bias_relu(a, w, b, x, ws, bs, *, out_dtype):
    m, k1 = a.shape
    n = w.shape[1]
    k2 = x.shape[1]
    tm, mp = _pick_m_tile(m)
    tn = _pick_n_tile(n)
    a = _pad_rows(a, mp)
    x = _pad_rows(x, mp)
    out = pl.pallas_call(
        _gemm_dual_bias_relu_kernel,
        out_shape=jax.ShapeDtypeStruct((mp, n), out_dtype),
        grid=(mp // tm, n // tn),
        in_specs=[
            pl.BlockSpec((tm, k1), lambda i, j: (i, 0)),
            pl.BlockSpec((k1, tn), lambda i, j: (0, j)),
            pl.BlockSpec((1, tn), lambda i, j: (0, j)),
            pl.BlockSpec((tm, k2), lambda i, j: (i, 0)),
            pl.BlockSpec((k2, tn), lambda i, j: (0, j)),
            pl.BlockSpec((1, tn), lambda i, j: (0, j)),
        ],
        out_specs=pl.BlockSpec((tm, tn), lambda i, j: (i, j)),
        compiler_params=pltpu.CompilerParams(
            dimension_semantics=("parallel", "parallel"),
            vmem_limit_bytes=_VMEM_LIMIT),
    )(a, w, b, x, ws, bs)
    return out[:m] if mp != m else out


def conv3x3_bn_relu(ys, w, b, *, stride, ho, wo, out_dtype):
    """ys: (s, N, Hq, s, Wq, Cin) phase-decomposed padded activations."""
    s, n, hq, _, wq, c_in = ys.shape
    c_out = w.shape[-1]
    tn = _pick_n_tile(c_out)
    return pl.pallas_call(
        functools.partial(_conv3x3_bn_relu_kernel, stride=stride, ho=ho, wo=wo),
        out_shape=jax.ShapeDtypeStruct((n, ho, wo, c_out), out_dtype),
        grid=(n, c_out // tn),
        in_specs=[
            pl.BlockSpec((s, None, hq, s, wq, c_in),
                         lambda i, j: (0, i, 0, 0, 0, 0)),
            pl.BlockSpec((3, 3, c_in, tn), lambda i, j: (0, 0, 0, j)),
            pl.BlockSpec((1, tn), lambda i, j: (0, j)),
        ],
        out_specs=pl.BlockSpec((None, ho, wo, tn), lambda i, j: (i, 0, 0, j)),
        compiler_params=pltpu.CompilerParams(
            dimension_semantics=("parallel", "parallel"),
            vmem_limit_bytes=_VMEM_LIMIT),
    )(ys, w, b)


# ----------------------------------------------------------------------------
# Glue (layout plumbing, BN folding)
# ----------------------------------------------------------------------------

def _bn_scale_shift(bn, eps=1e-5):
    gamma, beta, mean, var = bn
    scale = gamma * jax.lax.rsqrt(var + eps)
    shift = (beta - mean * scale).reshape(1, -1).astype(jnp.float32)
    return scale, shift


def _fold_1x1(w_oihw, bn):
    scale, shift = _bn_scale_shift(bn)
    w = w_oihw[:, :, 0, 0].T * scale[None, :]                 # (Cin, Cout)
    return w.astype(jnp.bfloat16), shift


def _fold_3x3(w_oihw, bn):
    scale, shift = _bn_scale_shift(bn)
    w = jnp.transpose(w_oihw, (2, 3, 1, 0)) * scale[None, None, None, :]  # (3,3,Cin,Cout)
    return w.astype(jnp.bfloat16), shift


def bottleneck_forward(x_nchw, p, stride):
    """Pallas implementation of Bottleneck.forward.  x_nchw: (N, Cin, H, W)."""
    x = jnp.transpose(x_nchw, (0, 2, 3, 1)).astype(jnp.float32)   # -> NHWC
    n, h, w, c_in = x.shape
    planes = p["w1"].shape[0]
    c_out = 4 * planes
    ho = (h - 1) // stride + 1
    wo = (w - 1) // stride + 1

    # conv1 (1x1) + bn1 + relu  (GEMM over rows = N*H*W, bf16 in / f32 acc)
    w1, b1 = _fold_1x1(p["w1"], p["bn1"])
    a1 = x.reshape(n * h * w, c_in).astype(jnp.bfloat16)
    y1 = gemm_bias(a1, w1, b1, relu=True, out_dtype=jnp.bfloat16)
    y1 = y1.reshape(n, h, w, planes)

    # conv2 (3x3, stride, pad=1) + bn2 + relu.  No HBM im2col: glue only pads
    # and phase-decomposes (space-to-depth over the stride); the 9 taps are
    # accumulated inside the kernel from shifted windows.
    s = stride
    pad_h = (-(h + 2)) % s
    pad_w = (-(w + 2)) % s
    y1p = jnp.pad(y1, ((0, 0), (1, 1 + pad_h), (1, 1 + pad_w), (0, 0)))
    hq = (h + 2 + pad_h) // s
    wq = (w + 2 + pad_w) // s
    ys = y1p.reshape(n, hq, s, wq, s, planes).transpose(2, 0, 1, 4, 3, 5)
    w2, b2 = _fold_3x3(p["w2"], p["bn2"])
    y2 = conv3x3_bn_relu(ys, w2, b2, stride=s, ho=ho, wo=wo,
                         out_dtype=jnp.bfloat16)

    # conv3 (1x1) + bn3 + shortcut + relu — residual fused into the same kernel.
    a3 = y2.reshape(n * ho * wo, planes)
    w3, b3 = _fold_1x1(p["w3"], p["bn3"])
    if stride != 1 or c_in != c_out:
        xs = x[:, ::stride, ::stride, :].reshape(n * ho * wo, c_in)
        xs = xs.astype(jnp.bfloat16)
        ws, bs = _fold_1x1(p["ws"], p["bns"])
        out = gemm_dual_bias_relu(a3, w3, b3, xs, ws, bs, out_dtype=jnp.float32)
    else:
        res = x.reshape(n * ho * wo, c_out).astype(jnp.bfloat16)
        out = gemm_bias_add_relu(a3, w3, b3, res, out_dtype=jnp.float32)

    out = out.reshape(n, ho, wo, c_out)
    return jnp.transpose(out, (0, 3, 1, 2))                       # back to NCHW


# ----------------------------------------------------------------------------
# Pure-JAX reference (for verification)
# ----------------------------------------------------------------------------

def _conv2d_nhwc(x, w_oihw, stride, padding):
    w_hwio = jnp.transpose(w_oihw, (2, 3, 1, 0))
    return jax.lax.conv_general_dilated(
        x, w_hwio, window_strides=(stride, stride),
        padding=[(padding, padding), (padding, padding)],
        dimension_numbers=("NHWC", "HWIO", "NHWC"))


def bottleneck_reference(x_nchw, p, stride):
    x = jnp.transpose(x_nchw, (0, 2, 3, 1)).astype(jnp.float32)

    def bn(y, bp):
        gamma, beta, mean, var = bp
        return gamma * (y - mean) / jnp.sqrt(var + 1e-5) + beta

    y = jax.nn.relu(bn(_conv2d_nhwc(x, p["w1"], 1, 0), p["bn1"]))
    y = jax.nn.relu(bn(_conv2d_nhwc(y, p["w2"], stride, 1), p["bn2"]))
    y = bn(_conv2d_nhwc(y, p["w3"], 1, 0), p["bn3"])
    c_in = x.shape[-1]
    c_out = p["w3"].shape[0]
    if stride != 1 or c_in != c_out:
        sc = bn(_conv2d_nhwc(x, p["ws"], stride, 0), p["bns"])
    else:
        sc = x
    out = jax.nn.relu(y + sc)
    return jnp.transpose(out, (0, 3, 1, 2))


# ----------------------------------------------------------------------------
# Deterministic parameter init (shapes per Bottleneck.__init__)
# ----------------------------------------------------------------------------

def init_params(key, in_planes, planes, stride):
    expansion = 4
    ks = jax.random.split(key, 8)

    def bn_params(k, c):
        k1, k2, k3, k4 = jax.random.split(k, 4)
        gamma = 1.0 + 0.1 * jax.random.normal(k1, (c,), jnp.float32)
        beta = 0.1 * jax.random.normal(k2, (c,), jnp.float32)
        mean = 0.1 * jax.random.normal(k3, (c,), jnp.float32)
        var = 0.5 + jax.random.uniform(k4, (c,), jnp.float32)
        return (gamma, beta, mean, var)

    p = {}
    p["w1"] = 0.1 * jax.random.normal(ks[0], (planes, in_planes, 1, 1), jnp.float32)
    p["bn1"] = bn_params(ks[1], planes)
    p["w2"] = 0.1 * jax.random.normal(ks[2], (planes, planes, 3, 3), jnp.float32)
    p["bn2"] = bn_params(ks[3], planes)
    p["w3"] = 0.1 * jax.random.normal(
        ks[4], (expansion * planes, planes, 1, 1), jnp.float32)
    p["bn3"] = bn_params(ks[5], expansion * planes)
    if stride != 1 or in_planes != expansion * planes:
        p["ws"] = 0.1 * jax.random.normal(
            ks[6], (expansion * planes, in_planes, 1, 1), jnp.float32)
        p["bns"] = bn_params(ks[7], expansion * planes)
    return p


# ----------------------------------------------------------------------------
# Main
# ----------------------------------------------------------------------------

if __name__ == "__main__":
    key = jax.random.PRNGKey(0)

    # Small shapes consistent with the module: Bottleneck(in_planes=16, planes=8, stride=2)
    N, Cin, H, W = 2, 16, 16, 16
    planes, stride = 8, 2

    params = init_params(key, Cin, planes, stride)
    x = jax.random.normal(jax.random.fold_in(key, 99), (N, Cin, H, W), jnp.float32)

    fwd = jax.jit(bottleneck_forward, static_argnums=2)
    out = jax.block_until_ready(fwd(x, params, stride))

    # Verify against pure-JAX f32 reference of the same math (bf16 I/O => looser tol).
    ref = bottleneck_reference(x, params, stride)
    assert out.shape == (N, 4 * planes, H // stride, W // stride), out.shape
    max_err = float(jnp.max(jnp.abs(out - ref)))
    tol = 5e-2 * (1.0 + float(jnp.max(jnp.abs(ref))))
    assert max_err < tol, f"mismatch vs reference: {max_err} (tol {tol})"

    print("KERNEL_OK")
</pallas_src>

<mosaic_0001>
module attributes {stable_mosaic.version = 11 : i64} {
  func.func @_gemm_bias_kernel(%arg0: i32, %arg1: i32, %arg2: memref<512x16xbf16, #tpu.memory_space<vmem>>, %arg3: memref<16x8xbf16, #tpu.memory_space<vmem>>, %arg4: memref<1x8xf32, #tpu.memory_space<vmem>>, %arg5: memref<512x8xbf16, #tpu.memory_space<vmem>>) attributes {dimension_semantics = [#tpu.dimension_semantics<parallel>, #tpu.dimension_semantics<parallel>], iteration_bounds = array<i64: 1, 1>, scalar_prefetch = 0 : i64, scratch_operands = 0 : i64, tpu.core_type = #tpu.core_type<tc>, window_params = [{transform_indices = @transform_0, window_bounds = array<i64: 512, 16>}, {transform_indices = @transform_1, window_bounds = array<i64: 16, 8>}, {transform_indices = @transform_2, window_bounds = array<i64: 1, 8>}, {transform_indices = @transform_3, window_bounds = array<i64: 512, 8>}]} {
    %c0 = arith.constant 0 : index
    %c0_0 = arith.constant 0 : index
    %0 = vector.load %arg2[%c0, %c0_0] : memref<512x16xbf16, #tpu.memory_space<vmem>>, vector<512x16xbf16>
    %c0_1 = arith.constant 0 : index
    %c0_2 = arith.constant 0 : index
    %1 = vector.load %arg3[%c0_1, %c0_2] : memref<16x8xbf16, #tpu.memory_space<vmem>>, vector<16x8xbf16>
    %cst = arith.constant dense<0.000000e+00> : vector<512x8xf32>
    %2 = tpu.matmul %0, %1, %cst {dimension_numbers = #tpu.dot_dimension_numbers<[1], [0], [0], [1], [0, 0, 1, 1], [], []>} : vector<512x16xbf16>, vector<16x8xbf16>, vector<512x8xf32> -> vector<512x8xf32>
    %c0_3 = arith.constant 0 : index
    %c0_4 = arith.constant 0 : index
    %3 = vector.load %arg4[%c0_3, %c0_4] : memref<1x8xf32, #tpu.memory_space<vmem>>, vector<1x8xf32>
    %4 = vector.broadcast %3 : vector<1x8xf32> to vector<512x8xf32>
    %5 = arith.addf %2, %4 : vector<512x8xf32>
    %cst_5 = arith.constant 0.000000e+00 : f32
    %6 = vector.broadcast %cst_5 : f32 to vector<512x8xf32>
    %7 = arith.maximumf %5, %6 : vector<512x8xf32>
    %8 = arith.truncf %7 : vector<512x8xf32> to vector<512x8xbf16>
    %c0_6 = arith.constant 0 : index
    %c0_7 = arith.constant 0 : index
    %9 = vector.load %arg5[%c0_6, %c0_7] : memref<512x8xbf16, #tpu.memory_space<vmem>>, vector<512x8xbf16>
    tpu.vector_store %arg5[%c0_6, %c0_7], %8 {strides = array<i32>} : memref<512x8xbf16, #tpu.memory_space<vmem>>, vector<512x8xbf16>,
    return
  }
  func.func @transform_0(%arg0: i32, %arg1: i32) -> (i32, i32) {
    %c0_i32 = arith.constant 0 : i32
    %c0_i32_0 = arith.constant 0 : i32
    return %arg0, %c0_i32 : i32, i32
  }
  func.func @transform_1(%arg0: i32, %arg1: i32) -> (i32, i32) {
    %c0_i32 = arith.constant 0 : i32
    %c0_i32_0 = arith.constant 0 : i32
    return %c0_i32, %arg1 : i32, i32
  }
  func.func @transform_2(%arg0: i32, %arg1: i32) -> (i32, i32) {
    %c0_i32 = arith.constant 0 : i32
    %c0_i32_0 = arith.constant 0 : i32
    return %c0_i32, %arg1 : i32, i32
  }
  func.func @transform_3(%arg0: i32, %arg1: i32) -> (i32, i32) {
    %c0_i32 = arith.constant 0 : i32
    return %arg0, %arg1 : i32, i32
  }
}

module attributes {stable_mosaic.version = 11 : i64} {
  func.func @_gemm_dual_bias_relu_kernel(%arg0: i32, %arg1: i32, %arg2: memref<128x8xbf16, #tpu.memory_space<vmem>>, %arg3: memref<8x32xbf16, #tpu.memory_space<vmem>>, %arg4: memref<1x32xf32, #tpu.memory_space<vmem>>, %arg5: memref<128x16xbf16, #tpu.memory_space<vmem>>, %arg6: memref<16x32xbf16, #tpu.memory_space<vmem>>, %arg7: memref<1x32xf32, #tpu.memory_space<vmem>>, %arg8: memref<128x32xf32, #tpu.memory_space<vmem>>) attributes {dimension_semantics = [#tpu.dimension_semantics<parallel>, #tpu.dimension_semantics<parallel>], iteration_bounds = array<i64: 1, 1>, scalar_prefetch = 0 : i64, scratch_operands = 0 : i64, tpu.core_type = #tpu.core_type<tc>, window_params = [{transform_indices = @transform_0, window_bounds = array<i64: 128, 8>}, {transform_indices = @transform_1, window_bounds = array<i64: 8, 32>}, {transform_indices = @transform_2, window_bounds = array<i64: 1, 32>}, {transform_indices = @transform_3, window_bounds = array<i64: 128, 16>}, {transform_indices = @transform_4, window_bounds = array<i64: 16, 32>}, {transform_indices = @transform_5, window_bounds = array<i64: 1, 32>}, {transform_indices = @transform_6, window_bounds = array<i64: 128, 32>}]} {
    %c0 = arith.constant 0 : index
    %c0_0 = arith.constant 0 : index
    %0 = vector.load %arg2[%c0, %c0_0] : memref<128x8xbf16, #tpu.memory_space<vmem>>, vector<128x8xbf16>
    %c0_1 = arith.constant 0 : index
    %c0_2 = arith.constant 0 : index
    %1 = vector.load %arg3[%c0_1, %c0_2] : memref<8x32xbf16, #tpu.memory_space<vmem>>, vector<8x32xbf16>
    %cst = arith.constant dense<0.000000e+00> : vector<128x32xf32>
    %2 = tpu.matmul %0, %1, %cst {dimension_numbers = #tpu.dot_dimension_numbers<[1], [0], [0], [1], [0, 0, 1, 1], [], []>} : vector<128x8xbf16>, vector<8x32xbf16>, vector<128x32xf32> -> vector<128x32xf32>
    %c0_3 = arith.constant 0 : index
    %c0_4 = arith.constant 0 : index
    %3 = vector.load %arg4[%c0_3, %c0_4] : memref<1x32xf32, #tpu.memory_space<vmem>>, vector<1x32xf32>
    %4 = vector.broadcast %3 : vector<1x32xf32> to vector<128x32xf32>
    %5 = arith.addf %2, %4 : vector<128x32xf32>
    %c0_5 = arith.constant 0 : index
    %c0_6 = arith.constant 0 : index
    %6 = vector.load %arg5[%c0_5, %c0_6] : memref<128x16xbf16, #tpu.memory_space<vmem>>, vector<128x16xbf16>
    %c0_7 = arith.constant 0 : index
    %c0_8 = arith.constant 0 : index
    %7 = vector.load %arg6[%c0_7, %c0_8] : memref<16x32xbf16, #tpu.memory_space<vmem>>, vector<16x32xbf16>
    %cst_9 = arith.constant dense<0.000000e+00> : vector<128x32xf32>
    %8 = tpu.matmul %6, %7, %cst_9 {dimension_numbers = #tpu.dot_dimension_numbers<[1], [0], [0], [1], [0, 0, 1, 1], [], []>} : vector<128x16xbf16>, vector<16x32xbf16>, vector<128x32xf32> -> vector<128x32xf32>
    %c0_10 = arith.constant 0 : index
    %c0_11 = arith.constant 0 : index
    %9 = vector.load %arg7[%c0_10, %c0_11] : memref<1x32xf32, #tpu.memory_space<vmem>>, vector<1x32xf32>
    %10 = vector.broadcast %9 : vector<1x32xf32> to vector<128x32xf32>
    %11 = arith.addf %8, %10 : vector<128x32xf32>
    %12 = arith.addf %5, %11 : vector<128x32xf32>
    %cst_12 = arith.constant 0.000000e+00 : f32
    %13 = vector.broadcast %cst_12 : f32 to vector<128x32xf32>
    %14 = arith.maximumf %12, %13 : vector<128x32xf32>
    %c0_13 = arith.constant 0 : index
    %c0_14 = arith.constant 0 : index
    %15 = vector.load %arg8[%c0_13, %c0_14] : memref<128x32xf32, #tpu.memory_space<vmem>>, vector<128x32xf32>
    tpu.vector_store %arg8[%c0_13, %c0_14], %14 {strides = array<i32>} : memref<128x32xf32, #tpu.memory_space<vmem>>, vector<128x32xf32>,
    return
  }
  func.func @transform_0(%arg0: i32, %arg1: i32) -> (i32, i32) {
    %c0_i32 = arith.constant 0 : i32
    %c0_i32_0 = arith.constant 0 : i32
    return %arg0, %c0_i32 : i32, i32
  }
  func.func @transform_1(%arg0: i32, %arg1: i32) -> (i32, i32) {
    %c0_i32 = arith.constant 0 : i32
    %c0_i32_0 = arith.constant 0 : i32
    return %c0_i32, %arg1 : i32, i32
  }
  func.func @transform_2(%arg0: i32, %arg1: i32) -> (i32, i32) {
    %c0_i32 = arith.constant 0 : i32
    %c0_i32_0 = arith.constant 0 : i32
    return %c0_i32, %arg1 : i32, i32
  }
  func.func @transform_3(%arg0: i32, %arg1: i32) -> (i32, i32) {
    %c0_i32 = arith.constant 0 : i32
    %c0_i32_0 = arith.constant 0 : i32
    return %arg0, %c0_i32 : i32, i32
  }
  func.func @transform_4(%arg0: i32, %arg1: i32) -> (i32, i32) {
    %c0_i32 = arith.constant 0 : i32
    %c0_i32_0 = arith.constant 0 : i32
    return %c0_i32, %arg1 : i32, i32
  }
  func.func @transform_5(%arg0: i32, %arg1: i32) -> (i32, i32) {
    %c0_i32 = arith.constant 0 : i32
    %c0_i32_0 = arith.constant 0 : i32
    return %c0_i32, %arg1 : i32, i32
  }
  func.func @transform_6(%arg0: i32, %arg1: i32) -> (i32, i32) {
    %c0_i32 = arith.constant 0 : i32
    return %arg0, %arg1 : i32, i32
  }
}

module attributes {stable_mosaic.version = 11 : i64} {
  func.func @_conv3x3_bn_relu_kernel(%arg0: i32, %arg1: i32, %arg2: memref<2x1x9x2x9x8xbf16, #tpu.memory_space<vmem>>, %arg3: memref<3x3x8x8xbf16, #tpu.memory_space<vmem>>, %arg4: memref<1x8xf32, #tpu.memory_space<vmem>>, %arg5: memref<1x8x8x8xbf16, #tpu.memory_space<vmem>>) attributes {dimension_semantics = [#tpu.dimension_semantics<parallel>, #tpu.dimension_semantics<parallel>], iteration_bounds = array<i64: 2, 1>, scalar_prefetch = 0 : i64, scratch_operands = 0 : i64, tpu.core_type = #tpu.core_type<tc>, window_params = [{transform_indices = @transform_0, window_bounds = array<i64: 2, 1, 9, 2, 9, 8>}, {transform_indices = @transform_1, window_bounds = array<i64: 3, 3, 8, 8>}, {transform_indices = @transform_2, window_bounds = array<i64: 1, 8>}, {transform_indices = @transform_3, window_bounds = array<i64: 1, 8, 8, 8>}]} {
    %cst = arith.constant 0.000000e+00 : f32
    %0 = vector.broadcast %cst : f32 to vector<64x8xf32>
    %c0 = arith.constant 0 : index
    %c0_0 = arith.constant 0 : index
    %c0_1 = arith.constant 0 : index
    %c0_2 = arith.constant 0 : index
    %c0_3 = arith.constant 0 : index
    %c0_4 = arith.constant 0 : index
    %1 = vector.load %arg2[%c0, %c0_0, %c0_1, %c0_2, %c0_3, %c0_4] : memref<2x1x9x2x9x8xbf16, #tpu.memory_space<vmem>>, vector<1x1x8x1x8x8xbf16>
    %2 = vector.shape_cast %1 : vector<1x1x8x1x8x8xbf16> to vector<8x8x8xbf16>
    %3 = vector.shape_cast %2 : vector<8x8x8xbf16> to vector<64x8xbf16>
    %c0_5 = arith.constant 0 : index
    %c0_6 = arith.constant 0 : index
    %c0_7 = arith.constant 0 : index
    %c0_8 = arith.constant 0 : index
    %4 = vector.load %arg3[%c0_5, %c0_6, %c0_7, %c0_8] : memref<3x3x8x8xbf16, #tpu.memory_space<vmem>>, vector<1x1x8x8xbf16>
    %5 = vector.shape_cast %4 : vector<1x1x8x8xbf16> to vector<8x8xbf16>
    %cst_9 = arith.constant dense<0.000000e+00> : vector<64x8xf32>
    %6 = tpu.matmul %3, %5, %cst_9 {dimension_numbers = #tpu.dot_dimension_numbers<[1], [0], [0], [1], [0, 0, 1, 1], [], []>} : vector<64x8xbf16>, vector<8x8xbf16>, vector<64x8xf32> -> vector<64x8xf32>
    %7 = arith.addf %0, %6 : vector<64x8xf32>
    %c0_10 = arith.constant 0 : index
    %c0_11 = arith.constant 0 : index
    %c0_12 = arith.constant 0 : index
    %c1 = arith.constant 1 : index
    %c0_13 = arith.constant 0 : index
    %c0_14 = arith.constant 0 : index
    %8 = vector.load %arg2[%c0_10, %c0_11, %c0_12, %c1, %c0_13, %c0_14] : memref<2x1x9x2x9x8xbf16, #tpu.memory_space<vmem>>, vector<1x1x8x1x8x8xbf16>
    %9 = vector.shape_cast %8 : vector<1x1x8x1x8x8xbf16> to vector<8x8x8xbf16>
    %10 = vector.shape_cast %9 : vector<8x8x8xbf16> to vector<64x8xbf16>
    %c0_15 = arith.constant 0 : index
    %c1_16 = arith.constant 1 : index
    %c0_17 = arith.constant 0 : index
    %c0_18 = arith.constant 0 : index
    %11 = vector.load %arg3[%c0_15, %c1_16, %c0_17, %c0_18] : memref<3x3x8x8xbf16, #tpu.memory_space<vmem>>, vector<1x1x8x8xbf16>
    %12 = vector.shape_cast %11 : vector<1x1x8x8xbf16> to vector<8x8xbf16>
    %cst_19 = arith.constant dense<0.000000e+00> : vector<64x8xf32>
    %13 = tpu.matmul %10, %12, %cst_19 {dimension_numbers = #tpu.dot_dimension_numbers<[1], [0], [0], [1], [0, 0, 1, 1], [], []>} : vector<64x8xbf16>, vector<8x8xbf16>, vector<64x8xf32> -> vector<64x8xf32>
    %14 = arith.addf %7, %13 : vector<64x8xf32>
    %c0_20 = arith.constant 0 : index
    %c0_21 = arith.constant 0 : index
    %c0_22 = arith.constant 0 : index
    %c0_23 = arith.constant 0 : index
    %c1_24 = arith.constant 1 : index
    %c0_25 = arith.constant 0 : index
    %15 = vector.load %arg2[%c0_20, %c0_21, %c0_22, %c0_23, %c1_24, %c0_25] : memref<2x1x9x2x9x8xbf16, #tpu.memory_space<vmem>>, vector<1x1x8x1x8x8xbf16>
    %16 = vector.shape_cast %15 : vector<1x1x8x1x8x8xbf16> to vector<8x8x8xbf16>
    %17 = vector.shape_cast %16 : vector<8x8x8xbf16> to vector<64x8xbf16>
    %c0_26 = arith.constant 0 : index
    %c2 = arith.constant 2 : index
    %c0_27 = arith.constant 0 : index
    %c0_28 = arith.constant 0 : index
    %18 = vector.load %arg3[%c0_26, %c2, %c0_27, %c0_28] : memref<3x3x8x8xbf16, #tpu.memory_space<vmem>>, vector<1x1x8x8xbf16>
    %19 = vector.shape_cast %18 : vector<1x1x8x8xbf16> to vector<8x8xbf16>
    %cst_29 = arith.constant dense<0.000000e+00> : vector<64x8xf32>
    %20 = tpu.matmul %17, %19, %cst_29 {dimension_numbers = #tpu.dot_dimension_numbers<[1], [0], [0], [1], [0, 0, 1, 1], [], []>} : vector<64x8xbf16>, vector<8x8xbf16>, vector<64x8xf32> -> vector<64x8xf32>
    %21 = arith.addf %14, %20 : vector<64x8xf32>
    %c1_30 = arith.constant 1 : index
    %c0_31 = arith.constant 0 : index
    %c0_32 = arith.constant 0 : index
    %c0_33 = arith.constant 0 : index
    %c0_34 = arith.constant 0 : index
    %c0_35 = arith.constant 0 : index
    %22 = vector.load %arg2[%c1_30, %c0_31, %c0_32, %c0_33, %c0_34, %c0_35] : memref<2x1x9x2x9x8xbf16, #tpu.memory_space<vmem>>, vector<1x1x8x1x8x8xbf16>
    %23 = vector.shape_cast %22 : vector<1x1x8x1x8x8xbf16> to vector<8x8x8xbf16>
    %24 = vector.shape_cast %23 : vector<8x8x8xbf16> to vector<64x8xbf16>
    %c1_36 = arith.constant 1 : index
    %c0_37 = arith.constant 0 : index
    %c0_38 = arith.constant 0 : index
    %c0_39 = arith.constant 0 : index
    %25 = vector.load %arg3[%c1_36, %c0_37, %c0_38, %c0_39] : memref<3x3x8x8xbf16, #tpu.memory_space<vmem>>, vector<1x1x8x8xbf16>
    %26 = vector.shape_cast %25 : vector<1x1x8x8xbf16> to vector<8x8xbf16>
    %cst_40 = arith.constant dense<0.000000e+00> : vector<64x8xf32>
    %27 = tpu.matmul %24, %26, %cst_40 {dimension_numbers = #tpu.dot_dimension_numbers<[1], [0], [0], [1], [0, 0, 1, 1], [], []>} : vector<64x8xbf16>, vector<8x8xbf16>, vector<64x8xf32> -> vector<64x8xf32>
    %28 = arith.addf %21, %27 : vector<64x8xf32>
    %c1_41 = arith.constant 1 : index
    %c0_42 = arith.constant 0 : index
    %c0_43 = arith.constant 0 : index
    %c1_44 = arith.constant 1 : index
    %c0_45 = arith.constant 0 : index
    %c0_46 = arith.constant 0 : index
    %29 = vector.load %arg2[%c1_41, %c0_42, %c0_43, %c1_44, %c0_45, %c0_46] : memref<2x1x9x2x9x8xbf16, #tpu.memory_space<vmem>>, vector<1x1x8x1x8x8xbf16>
    %30 = vector.shape_cast %29 : vector<1x1x8x1x8x8xbf16> to vector<8x8x8xbf16>
    %31 = vector.shape_cast %30 : vector<8x8x8xbf16> to vector<64x8xbf16>
    %c1_47 = arith.constant 1 : index
    %c1_48 = arith.constant 1 : index
    %c0_49 = arith.constant 0 : index
    %c0_50 = arith.constant 0 : index
    %32 = vector.load %arg3[%c1_47, %c1_48, %c0_49, %c0_50] : memref<3x3x8x8xbf16, #tpu.memory_space<vmem>>, vector<1x1x8x8xbf16>
    %33 = vector.shape_cast %32 : vector<1x1x8x8xbf16> to vector<8x8xbf16>
    %cst_51 = arith.constant dense<0.000000e+00> : vector<64x8xf32>
    %34 = tpu.matmul %31, %33, %cst_51 {dimension_numbers = #tpu.dot_dimension_numbers<[1], [0], [0], [1], [0, 0, 1, 1], [], []>} : vector<64x8xbf16>, vector<8x8xbf16>, vector<64x8xf32> -> vector<64x8xf32>
    %35 = arith.addf %28, %34 : vector<64x8xf32>
    %c1_52 = arith.constant 1 : index
    %c0_53 = arith.constant 0 : index
    %c0_54 = arith.constant 0 : index
    %c0_55 = arith.constant 0 : index
    %c1_56 = arith.constant 1 : index
    %c0_57 = arith.constant 0 : index
    %36 = vector.load %arg2[%c1_52, %c0_53, %c0_54, %c0_55, %c1_56, %c0_57] : memref<2x1x9x2x9x8xbf16, #tpu.memory_space<vmem>>, vector<1x1x8x1x8x8xbf16>
    %37 = vector.shape_cast %36 : vector<1x1x8x1x8x8xbf16> to vector<8x8x8xbf16>
    %38 = vector.shape_cast %37 : vector<8x8x8xbf16> to vector<64x8xbf16>
    %c1_58 = arith.constant 1 : index
    %c2_59 = arith.constant 2 : index
    %c0_60 = arith.constant 0 : index
    %c0_61 = arith.constant 0 : index
    %39 = vector.load %arg3[%c1_58, %c2_59, %c0_60, %c0_61] : memref<3x3x8x8xbf16, #tpu.memory_space<vmem>>, vector<1x1x8x8xbf16>
    %40 = vector.shape_cast %39 : vector<1x1x8x8xbf16> to vector<8x8xbf16>
    %cst_62 = arith.constant dense<0.000000e+00> : vector<64x8xf32>
    %41 = tpu.matmul %38, %40, %cst_62 {dimension_numbers = #tpu.dot_dimension_numbers<[1], [0], [0], [1], [0, 0, 1, 1], [], []>} : vector<64x8xbf16>, vector<8x8xbf16>, vector<64x8xf32> -> vector<64x8xf32>
    %42 = arith.addf %35, %41 : vector<64x8xf32>
    %c0_63 = arith.constant 0 : index
    %c0_64 = arith.constant 0 : index
    %c1_65 = arith.constant 1 : index
    %c0_66 = arith.constant 0 : index
    %c0_67 = arith.constant 0 : index
    %c0_68 = arith.constant 0 : index
    %43 = vector.load %arg2[%c0_63, %c0_64, %c1_65, %c0_66, %c0_67, %c0_68] : memref<2x1x9x2x9x8xbf16, #tpu.memory_space<vmem>>, vector<1x1x8x1x8x8xbf16>
    %44 = vector.shape_cast %43 : vector<1x1x8x1x8x8xbf16> to vector<8x8x8xbf16>
    %45 = vector.shape_cast %44 : vector<8x8x8xbf16> to vector<64x8xbf16>
    %c2_69 = arith.constant 2 : index
    %c0_70 = arith.constant 0 : index
    %c0_71 = arith.constant 0 : index
    %c0_72 = arith.constant 0 : index
    %46 = vector.load %arg3[%c2_69, %c0_70, %c0_71, %c0_72] : memref<3x3x8x8xbf16, #tpu.memory_space<vmem>>, vector<1x1x8x8xbf16>
    %47 = vector.shape_cast %46 : vector<1x1x8x8xbf16> to vector<8x8xbf16>
    %cst_73 = arith.constant dense<0.000000e+00> : vector<64x8xf32>
    %48 = tpu.matmul %45, %47, %cst_73 {dimension_numbers = #tpu.dot_dimension_numbers<[1], [0], [0], [1], [0, 0, 1, 1], [], []>} : vector<64x8xbf16>, vector<8x8xbf16>, vector<64x8xf32> -> vector<64x8xf32>
    %49 = arith.addf %42, %48 : vector<64x8xf32>
    %c0_74 = arith.constant 0 : index
    %c0_75 = arith.constant 0 : index
    %c1_76 = arith.constant 1 : index
    %c1_77 = arith.constant 1 : index
    %c0_78 = arith.constant 0 : index
    %c0_79 = arith.constant 0 : index
    %50 = vector.load %arg2[%c0_74, %c0_75, %c1_76, %c1_77, %c0_78, %c0_79] : memref<2x1x9x2x9x8xbf16, #tpu.memory_space<vmem>>, vector<1x1x8x1x8x8xbf16>
    %51 = vector.shape_cast %50 : vector<1x1x8x1x8x8xbf16> to vector<8x8x8xbf16>
    %52 = vector.shape_cast %51 : vector<8x8x8xbf16> to vector<64x8xbf16>
    %c2_80 = arith.constant 2 : index
    %c1_81 = arith.constant 1 : index
    %c0_82 = arith.constant 0 : index
    %c0_83 = arith.constant 0 : index
    %53 = vector.load %arg3[%c2_80, %c1_81, %c0_82, %c0_83] : memref<3x3x8x8xbf16, #tpu.memory_space<vmem>>, vector<1x1x8x8xbf16>
    %54 = vector.shape_cast %53 : vector<1x1x8x8xbf16> to vector<8x8xbf16>
    %cst_84 = arith.constant dense<0.000000e+00> : vector<64x8xf32>
    %55 = tpu.matmul %52, %54, %cst_84 {dimension_numbers = #tpu.dot_dimension_numbers<[1], [0], [0], [1], [0, 0, 1, 1], [], []>} : vector<64x8xbf16>, vector<8x8xbf16>, vector<64x8xf32> -> vector<64x8xf32>
    %56 = arith.addf %49, %55 : vector<64x8xf32>
    %c0_85 = arith.constant 0 : index
    %c0_86 = arith.constant 0 : index
    %c1_87 = arith.constant 1 : index
    %c0_88 = arith.constant 0 : index
    %c1_89 = arith.constant 1 : index
    %c0_90 = arith.constant 0 : index
    %57 = vector.load %arg2[%c0_85, %c0_86, %c1_87, %c0_88, %c1_89, %c0_90] : memref<2x1x9x2x9x8xbf16, #tpu.memory_space<vmem>>, vector<1x1x8x1x8x8xbf16>
    %58 = vector.shape_cast %57 : vector<1x1x8x1x8x8xbf16> to vector<8x8x8xbf16>
    %59 = vector.shape_cast %58 : vector<8x8x8xbf16> to vector<64x8xbf16>
    %c2_91 = arith.constant 2 : index
    %c2_92 = arith.constant 2 : index
    %c0_93 = arith.constant 0 : index
    %c0_94 = arith.constant 0 : index
    %60 = vector.load %arg3[%c2_91, %c2_92, %c0_93, %c0_94] : memref<3x3x8x8xbf16, #tpu.memory_space<vmem>>, vector<1x1x8x8xbf16>
    %61 = vector.shape_cast %60 : vector<1x1x8x8xbf16> to vector<8x8xbf16>
    %cst_95 = arith.constant dense<0.000000e+00> : vector<64x8xf32>
    %62 = tpu.matmul %59, %61, %cst_95 {dimension_numbers = #tpu.dot_dimension_numbers<[1], [0], [0], [1], [0, 0, 1, 1], [], []>} : vector<64x8xbf16>, vector<8x8xbf16>, vector<64x8xf32> -> vector<64x8xf32>
    %63 = arith.addf %56, %62 : vector<64x8xf32>
    %c0_96 = arith.constant 0 : index
    %c0_97 = arith.constant 0 : index
    %64 = vector.load %arg4[%c0_96, %c0_97] : memref<1x8xf32, #tpu.memory_space<vmem>>, vector<1x8xf32>
    %65 = vector.broadcast %64 : vector<1x8xf32> to vector<64x8xf32>
    %66 = arith.addf %63, %65 : vector<64x8xf32>
    %cst_98 = arith.constant 0.000000e+00 : f32
    %67 = vector.broadcast %cst_98 : f32 to vector<64x8xf32>
    %68 = arith.maximumf %66, %67 : vector<64x8xf32>
    %69 = vector.shape_cast %68 : vector<64x8xf32> to vector<8x8x8xf32>
    %70 = arith.truncf %69 : vector<8x8x8xf32> to vector<8x8x8xbf16>
    %c0_99 = arith.constant 0 : index
    %c0_100 = arith.constant 0 : index
    %c0_101 = arith.constant 0 : index
    %c0_102 = arith.constant 0 : index
    %71 = vector.load %arg5[%c0_99, %c0_100, %c0_101, %c0_102] : memref<1x8x8x8xbf16, #tpu.memory_space<vmem>>, vector<1x8x8x8xbf16>
    %72 = vector.shape_cast %71 : vector<1x8x8x8xbf16> to vector<8x8x8xbf16>
    %73 = vector.shape_cast %70 : vector<8x8x8xbf16> to vector<1x8x8x8xbf16>
    tpu.vector_store %arg5[%c0_99, %c0_100, %c0_101, %c0_102], %73 {strides = array<i32>} : memref<1x8x8x8xbf16, #tpu.memory_space<vmem>>, vector<1x8x8x8xbf16>,
    return
  }
  func.func @transform_0(%arg0: i32, %arg1: i32) -> (i32, i32, i32, i32, i32, i32) {
    %c0_i32 = arith.constant 0 : i32
    %c0_i32_0 = arith.constant 0 : i32
    %c0_i32_1 = arith.constant 0 : i32
    %c0_i32_2 = arith.constant 0 : i32
    %c0_i32_3 = arith.constant 0 : i32
    %c0_i32_4 = arith.constant 0 : i32
    return %c0_i32, %arg0, %c0_i32_0, %c0_i32_1, %c0_i32_2, %c0_i32_3 : i32, i32, i32, i32, i32, i32
  }
  func.func @transform_1(%arg0: i32, %arg1: i32) -> (i32, i32, i32, i32) {
    %c0_i32 = arith.constant 0 : i32
    %c0_i32_0 = arith.constant 0 : i32
    %c0_i32_1 = arith.constant 0 : i32
    %c0_i32_2 = arith.constant 0 : i32
    return %c0_i32, %c0_i32_0, %c0_i32_1, %arg1 : i32, i32, i32, i32
  }
  func.func @transform_2(%arg0: i32, %arg1: i32) -> (i32, i32) {
    %c0_i32 = arith.constant 0 : i32
    %c0_i32_0 = arith.constant 0 : i32
    return %c0_i32, %arg1 : i32, i32
  }
  func.func @transform_3(%arg0: i32, %arg1: i32) -> (i32, i32, i32, i32) {
    %c0_i32 = arith.constant 0 : i32
    %c0_i32_0 = arith.constant 0 : i32
    %c0_i32_1 = arith.constant 0 : i32
    return %arg0, %c0_i32, %c0_i32_0, %arg1 : i32, i32, i32, i32
  }
}

</mosaic_0001>

<bundles_post_ra>
// kernel: bottleneck_forward.5
= control target key start
LH: loop header
LB: loop body
LE: loop exit
PB: predicated region body
PF: predicated region fallthrough
CT: control target
= control target key end

     0   :  { %vm111_vm0 = vcmask 1043456   ;;  %vm86_vm1 = vcmask 64512   ;;  %vm232_vm2 = vcmask 130048   ;;  %s676_s0 = inlined_call_operand.vmem [shape: bf16[128,8], index: 0, kind: input, shape index: {}]   ;;  %s677_s1 = inlined_call_operand.vmem [shape: bf16[8,32], index: 1, kind: input, shape index: {}]   ;;  %s678_s2 = inlined_call_operand.vmem [shape: f32[1,32], index: 2, kind: input, shape index: {}]   ;;  %s679_s3 = inlined_call_operand.vmem [shape: bf16[128,16], index: 3, kind: input, shape index: {}]   ;;  %s680_s4 = inlined_call_operand.vmem [shape: bf16[16,32], index: 4, kind: input, shape index: {}]   ;;  %s681_s5 = inlined_call_operand.vmem [shape: f32[1,32], index: 5, kind: input, shape index: {}]   ;;  %s682_s6 = inlined_call_operand.hbm [shape: f32[128,32], index: 6, kind: output, shape index: {}]  }
   0x1   :  { %v41_v0 = vld [vmem:[%s677_s1] sm:$0xf] }
   0x2   :  { %v473_v1 = vld [vmem:[%s680_s4] sm:$0xff]  ;;  %v113_v2 = vsel %vm111_vm0, %v41_v0, 0 }
   0x3   :  { %v457_v3 = vld [vmem:[%s676_s0] sm:$0xff]  ;;  %122 = vmatpush.bf16.msra.mxu0 %v113_v2  ;;  %474 = vmatpush.bf16.msra.mxu2 %v113_v2 }
   0x4   :  { %v461_v4 = vld [vmem:[%s676_s0 + $0x20] sm:$0xff]  ;;  %264 = vmatpush.bf16.msra.mxu1 %v473_v1  ;;  %475 = vmatpush.bf16.msra.mxu3 %v473_v1 }
   0x5   :  { %v465_v5 = vld [vmem:[%s679_s3] sm:$0xff] }
   0x6   :  { %v469_v6 = vld [vmem:[%s679_s3 + $0x20] sm:$0xff]  ;;  %405 = vmatmul.msk.bf16.vlgmr.msra.gmra.mxu0 %vm86_vm1, %v457_v3  ;;  %409 = vmatmul.msk.bf16.vlgmr.msra.gmra.mxu2 %vm86_vm1, %v461_v4 }
   0x7   :  { %11 = vsyncpa [#allocation3], 0  ;;  %449 = vmatmul.msk.bf16.vlgmr.msra.gmra.mxu1 %vm232_vm2, %v465_v5  ;;  %453 = vmatmul.msk.bf16.vlgmr.msra.gmra.mxu3 %vm232_vm2, %v469_v6  ;;  %v458_v7 = vld [vmem:[%s676_s0 + $0x8] sm:$0xff]  ;;  %v459_v11 = vld [vmem:[%s676_s0 + $0x10] sm:$0xff]  ;;  %vm338_vm3 = vcmask 261120   ;;  %s361_s9 = sshll.u32 %s682_s6, 4  ;;  %s362_s9 = int_to_ptr.hbm [resolvable:$true] %s361_s9 }
   0x8   :  { %v462_v8 = vld [vmem:[%s676_s0 + $0x28] sm:$0xff]  ;;  %v463_v12 = vld [vmem:[%s676_s0 + $0x30] sm:$0xff]  ;;  %v460_v15 = vld [vmem:[%s676_s0 + $0x18] sm:$0xff]  ;;  %s508_s10 = smov 128   ;;  %s509_s11 = smov 8  }
   0x9   :  { %v466_v9 = vld [vmem:[%s679_s3 + $0x8] sm:$0xff]  ;;  %v467_v13 = vld [vmem:[%s679_s3 + $0x10] sm:$0xff]  ;;  %v464_v16 = vld [vmem:[%s676_s0 + $0x38] sm:$0xff] }
   0xa   :  { %v470_v10 = vld [vmem:[%s679_s3 + $0x28] sm:$0xff]  ;;  %v471_v14 = vld [vmem:[%s679_s3 + $0x30] sm:$0xff]  ;;  %v468_v17 = vld [vmem:[%s679_s3 + $0x18] sm:$0xff] }
   0xb   :  { %v472_v18 = vld [vmem:[%s679_s3 + $0x38] sm:$0xff]  ;;  %v618_v19 = vld [vmem:[%s678_s2] ss:$0 sm:$0xff]  ;;  %s507_s2 = smov [#allocation2]  }
   0xc   :  { %v623_v20 = vld [vmem:[%s681_s5] ss:$0 sm:$0xff]  ;;  %s359_s3 = sshll.u32 %s507_s2, 4  ;;  %s360_s3 = int_to_ptr.vmem [resolvable:$true] %s359_s3 }
  0x16   :  { %406 = vmatmul.msk.bf16.gmra.mxu0 %vm86_vm1, %v458_v7  ;;  %410 = vmatmul.msk.bf16.gmra.mxu2 %vm86_vm1, %v462_v8 }
  0x17   :  { %450 = vmatmul.msk.bf16.gmra.mxu1 %vm232_vm2, %v466_v9  ;;  %454 = vmatmul.msk.bf16.gmra.mxu3 %vm232_vm2, %v470_v10 }
  0x26   :  { %407 = vmatmul.msk.bf16.gmra.mxu0 %vm86_vm1, %v459_v11  ;;  %411 = vmatmul.msk.bf16.gmra.mxu2 %vm86_vm1, %v463_v12 }
  0x27   :  { %451 = vmatmul.msk.bf16.gmra.mxu1 %vm232_vm2, %v467_v13  ;;  %455 = vmatmul.msk.bf16.gmra.mxu3 %vm232_vm2, %v471_v14 }
  0x36   :  { %408 = vmatmul.msk.bf16.gmra.mxu0 %vm86_vm1, %v460_v15  ;;  %412 = vmatmul.msk.bf16.gmra.mxu2 %vm86_vm1, %v464_v16 }
  0x37   :  { %452 = vmatmul.msk.bf16.gmra.mxu1 %vm232_vm2, %v468_v17  ;;  %456 = vmatmul.msk.bf16.gmra.mxu3 %vm232_vm2, %v472_v18 }
  0x83   :  { %v124_v21 = vpop.f32.mrf.mxu0 }
  0x84   :  { %v125_v22 = vadd.f32 %v618_v19, %v124_v21  ;;  %v266_v23 = vpop.f32.mrf.mxu1 }
  0x85   :  { %v267_v24 = vadd.f32 %v623_v20, %v266_v23 }
  0x87   :  { %v306_v25 = vadd.f32 %v267_v24, %v125_v22 }
  0x89   :  { %v322_v26 = vmax.f32 %v306_v25, 0.0  ;;  %v144_v27 = vpop.f32.mrf.mxu2 }
  0x8a   :  { %v145_v28 = vadd.f32 %v618_v19, %v144_v27  ;;  %v286_v29 = vpop.f32.mrf.mxu3 }
  0x8b   :  { %339 = vst.msk [vmem:[#allocation2] sm:$0xff] %vm338_vm3, %v322_v26  ;;  %v287_v30 = vadd.f32 %v623_v20, %v286_v29  ;;  %v126_v31 = vpop.f32.mrf.mxu0 }
  0x8c   :  { %v127_v32 = vadd.f32 %v618_v19, %v126_v31  ;;  %v268_v33 = vpop.f32.mrf.mxu1 }
  0x8d   :  { %v314_v34 = vadd.f32 %v287_v30, %v145_v28  ;;  %v269_v35 = vadd.f32 %v623_v20, %v268_v33 }
  0x8f   :  { %v330_v36 = vmax.f32 %v314_v34, 0.0  ;;  %v307_v37 = vadd.f32 %v269_v35, %v127_v32 }
  0x91   :  { %347 = vst.msk [vmem:[#allocation2 + $0x40] sm:$0xff] %vm338_vm3, %v330_v36  ;;  %v323_v38 = vmax.f32 %v307_v37, 0.0  ;;  %v146_v39 = vpop.f32.mrf.mxu2 }
  0x92   :  { %v147_v40 = vadd.f32 %v618_v19, %v146_v39  ;;  %v288_v41 = vpop.f32.mrf.mxu3 }
  0x93   :  { %340 = vst.msk [vmem:[#allocation2 + $0x8] sm:$0xff] %vm338_vm3, %v323_v38  ;;  %v289_v42 = vadd.f32 %v623_v20, %v288_v41  ;;  %v129_v43 = vpop.f32.mrf.mxu0 }
  0x94   :  { %v130_v44 = vadd.f32 %v618_v19, %v129_v43  ;;  %v271_v45 = vpop.f32.mrf.mxu1 }
  0x95   :  { %v315_v46 = vadd.f32 %v289_v42, %v147_v40  ;;  %v272_v47 = vadd.f32 %v623_v20, %v271_v45 }
  0x97   :  { %v331_v48 = vmax.f32 %v315_v46, 0.0  ;;  %v308_v49 = vadd.f32 %v272_v47, %v130_v44 }
  0x99   :  { %348 = vst.msk [vmem:[#allocation2 + $0x48] sm:$0xff] %vm338_vm3, %v331_v48  ;;  %v324_v50 = vmax.f32 %v308_v49, 0.0  ;;  %v149_v51 = vpop.f32.mrf.mxu2 }
  0x9a   :  { %v150_v52 = vadd.f32 %v618_v19, %v149_v51  ;;  %v291_v53 = vpop.f32.mrf.mxu3 }
  0x9b   :  { %341 = vst.msk [vmem:[#allocation2 + $0x10] sm:$0xff] %vm338_vm3, %v324_v50  ;;  %v292_v54 = vadd.f32 %v623_v20, %v291_v53  ;;  %v131_v55 = vpop.f32.mrf.mxu0 }
  0x9c   :  { %v132_v56 = vadd.f32 %v618_v19, %v131_v55  ;;  %v273_v57 = vpop.f32.mrf.mxu1 }
  0x9d   :  { %v316_v58 = vadd.f32 %v292_v54, %v150_v52  ;;  %v274_v59 = vadd.f32 %v623_v20, %v273_v57 }
  0x9f   :  { %v332_v60 = vmax.f32 %v316_v58, 0.0  ;;  %v309_v61 = vadd.f32 %v274_v59, %v132_v56 }
  0xa1   :  { %349 = vst.msk [vmem:[#allocation2 + $0x50] sm:$0xff] %vm338_vm3, %v332_v60  ;;  %v325_v62 = vmax.f32 %v309_v61, 0.0  ;;  %v151_v63 = vpop.f32.mrf.mxu2 }
  0xa2   :  { %v152_v0 = vadd.f32 %v618_v19, %v151_v63  ;;  %v293_v1 = vpop.f32.mrf.mxu3 }
  0xa3   :  { %342 = vst.msk [vmem:[#allocation2 + $0x18] sm:$0xff] %vm338_vm3, %v325_v62  ;;  %v294_v2 = vadd.f32 %v623_v20, %v293_v1  ;;  %v134_v3 = vpop.f32.mrf.mxu0 }
  0xa4   :  { %v135_v4 = vadd.f32 %v618_v19, %v134_v3  ;;  %v276_v5 = vpop.f32.mrf.mxu1 }
  0xa5   :  { %v317_v6 = vadd.f32 %v294_v2, %v152_v0  ;;  %v277_v7 = vadd.f32 %v623_v20, %v276_v5 }
  0xa7   :  { %v333_v8 = vmax.f32 %v317_v6, 0.0  ;;  %v310_v9 = vadd.f32 %v277_v7, %v135_v4 }
  0xa9   :  { %350 = vst.msk [vmem:[#allocation2 + $0x58] sm:$0xff] %vm338_vm3, %v333_v8  ;;  %v326_v10 = vmax.f32 %v310_v9, 0.0  ;;  %v154_v11 = vpop.f32.mrf.mxu2 }
  0xaa   :  { %v155_v12 = vadd.f32 %v618_v19, %v154_v11  ;;  %v296_v13 = vpop.f32.mrf.mxu3 }
  0xab   :  { %343 = vst.msk [vmem:[#allocation2 + $0x20] sm:$0xff] %vm338_vm3, %v326_v10  ;;  %v297_v14 = vadd.f32 %v623_v20, %v296_v13  ;;  %v136_v15 = vpop.f32.mrf.mxu0 }
  0xac   :  { %v137_v16 = vadd.f32 %v618_v19, %v136_v15  ;;  %v278_v17 = vpop.f32.mrf.mxu1 }
  0xad   :  { %v318_v18 = vadd.f32 %v297_v14, %v155_v12  ;;  %v279_v21 = vadd.f32 %v623_v20, %v278_v17 }
  0xaf   :  { %v334_v22 = vmax.f32 %v318_v18, 0.0  ;;  %v311_v23 = vadd.f32 %v279_v21, %v137_v16 }
  0xb1   :  { %351 = vst.msk [vmem:[#allocation2 + $0x60] sm:$0xff] %vm338_vm3, %v334_v22  ;;  %v327_v24 = vmax.f32 %v311_v23, 0.0  ;;  %v156_v25 = vpop.f32.mrf.mxu2 }
  0xb2   :  { %v157_v26 = vadd.f32 %v618_v19, %v156_v25  ;;  %v298_v27 = vpop.f32.mrf.mxu3 }
  0xb3   :  { %344 = vst.msk [vmem:[#allocation2 + $0x28] sm:$0xff] %vm338_vm3, %v327_v24  ;;  %v299_v28 = vadd.f32 %v623_v20, %v298_v27  ;;  %v139_v29 = vpop.f32.mrf.mxu0 }
  0xb4   :  { %v140_v30 = vadd.f32 %v618_v19, %v139_v29  ;;  %v281_v31 = vpop.f32.mrf.mxu1 }
  0xb5   :  { %v319_v32 = vadd.f32 %v299_v28, %v157_v26  ;;  %v282_v33 = vadd.f32 %v623_v20, %v281_v31 }
  0xb7   :  { %v335_v34 = vmax.f32 %v319_v32, 0.0  ;;  %v312_v35 = vadd.f32 %v282_v33, %v140_v30 }
  0xb9   :  { %352 = vst.msk [vmem:[#allocation2 + $0x68] sm:$0xff] %vm338_vm3, %v335_v34  ;;  %v328_v36 = vmax.f32 %v312_v35, 0.0  ;;  %v159_v37 = vpop.f32.mrf.mxu2 }
  0xba   :  { %v160_v38 = vadd.f32 %v618_v19, %v159_v37  ;;  %v301_v39 = vpop.f32.mrf.mxu3 }
  0xbb   :  { %345 = vst.msk [vmem:[#allocation2 + $0x30] sm:$0xff] %vm338_vm3, %v328_v36  ;;  %v302_v40 = vadd.f32 %v623_v20, %v301_v39  ;;  %v141_v41 = vpop.f32.mrf.mxu0 }
  0xbc   :  { %v142_v42 = vadd.f32 %v618_v19, %v141_v41  ;;  %v283_v43 = vpop.f32.mrf.mxu1 }
  0xbd   :  { %v320_v44 = vadd.f32 %v302_v40, %v160_v38  ;;  %v284_v45 = vadd.f32 %v623_v20, %v283_v43 }
  0xbf   :  { %v336_v46 = vmax.f32 %v320_v44, 0.0  ;;  %v313_v47 = vadd.f32 %v284_v45, %v142_v42 }
  0xc1   :  { %353 = vst.msk [vmem:[#allocation2 + $0x70] sm:$0xff] %vm338_vm3, %v336_v46  ;;  %v329_v48 = vmax.f32 %v313_v47, 0.0  ;;  %v161_v49 = vpop.f32.mrf.mxu2 }
  0xc2   :  { %v162_v50 = vadd.f32 %v618_v19, %v161_v49  ;;  %v303_v51 = vpop.f32.mrf.mxu3 }
  0xc3   :  { %346 = vst.msk [vmem:[#allocation2 + $0x38] sm:$0xff] %vm338_vm3, %v329_v48  ;;  %v304_v52 = vadd.f32 %v623_v20, %v303_v51 }
  0xc5   :  { %v321_v53 = vadd.f32 %v304_v52, %v162_v50 }
  0xc7   :  { %v337_v54 = vmax.f32 %v321_v53, 0.0 }
  0xc9   :  { %354 = vst.msk [vmem:[#allocation2 + $0x78] sm:$0xff] %vm338_vm3, %v337_v54 }
  0xca   :  { %367 = dma.vmem_to_hbm [thread:$0]  %s360_s3, 2048, %s362_s9, [#allocation3], %s508_s10, %s508_s10, %s509_s11  }
  0xcb   :  { %505 = dma.done.wait [#allocation3], 2048  }
  0xcc   :  { %506 = vsyncadd [#allocation3], 4294965248 }
  0xcd   :  { %372 = vsyncpa [#allocation3], 1 }

// kernel: bottleneck_forward.3
= control target key start
LH: loop header
LB: loop body
LE: loop exit
PB: predicated region body
PF: predicated region fallthrough
CT: control target
= control target key end

     0   :  { %vm251_vm0 = vcmask 130048   ;;  %vm645_vm1 = vcmask 60416   ;;  %s1391_s1 = inlined_call_operand.vmem [shape: bf16[16,8], index: 1, kind: input, shape index: {}]   ;;  %s1392_s0 = inlined_call_operand.vmem [shape: bf16[512,16], index: 0, kind: input, shape index: {}]   ;;  %s1393_s2 = inlined_call_operand.vmem [shape: f32[1,8], index: 2, kind: input, shape index: {}]   ;;  %s1394_s3 = inlined_call_operand.vmem [shape: bf16[512,8], index: 3, kind: output, shape index: {}]  }
   0x1   :  { %v910_v0 = vld [vmem:[%s1391_s1] sm:$0xff]  ;;  %v879_v5 = vld [vmem:[%s1392_s0 + $0x8] sm:$0xff]  ;;  %v880_v9 = vld [vmem:[%s1392_s0 + $0x10] sm:$0xff] }
   0x2   :  { %v878_v1 = vld [vmem:[%s1392_s0] sm:$0xff]  ;;  %355 = vmatpush.bf16.msra.mxu0 %v910_v0  ;;  %911 = vmatpush.bf16.msra.mxu1 %v910_v0  ;;  %v887_v6 = vld [vmem:[%s1392_s0 + $0x48] sm:$0xff]  ;;  %v888_v10 = vld [vmem:[%s1392_s0 + $0x50] sm:$0xff] }
   0x3   :  { %v886_v2 = vld [vmem:[%s1392_s0 + $0x40] sm:$0xff]  ;;  %912 = vmatpush.bf16.msra.mxu2 %v910_v0  ;;  %913 = vmatpush.bf16.msra.mxu3 %v910_v0  ;;  %v895_v7 = vld [vmem:[%s1392_s0 + $0x88] sm:$0xff]  ;;  %v896_v11 = vld [vmem:[%s1392_s0 + $0x90] sm:$0xff] }
   0x4   :  { %v894_v3 = vld [vmem:[%s1392_s0 + $0x80] sm:$0xff]  ;;  %v903_v8 = vld [vmem:[%s1392_s0 + $0xc8] sm:$0xff]  ;;  %v904_v12 = vld [vmem:[%s1392_s0 + $0xd0] sm:$0xff] }
   0x5   :  { %v902_v4 = vld [vmem:[%s1392_s0 + $0xc0] sm:$0xff]  ;;  %846 = vmatmul.msk.bf16.vlgmr.msra.gmra.mxu0 %vm251_vm0, %v878_v1  ;;  %854 = vmatmul.msk.bf16.vlgmr.msra.gmra.mxu1 %vm251_vm0, %v886_v2  ;;  %v881_v13 = vld [vmem:[%s1392_s0 + $0x18] sm:$0xff]  ;;  %v883_v21 = vld [vmem:[%s1392_s0 + $0x28] sm:$0xff] }
   0x6   :  { %862 = vmatmul.msk.bf16.vlgmr.msra.gmra.mxu2 %vm251_vm0, %v894_v3  ;;  %870 = vmatmul.msk.bf16.vlgmr.msra.gmra.mxu3 %vm251_vm0, %v902_v4  ;;  %v889_v14 = vld [vmem:[%s1392_s0 + $0x58] sm:$0xff]  ;;  %v882_v17 = vld [vmem:[%s1392_s0 + $0x20] sm:$0xff]  ;;  %v891_v22 = vld [vmem:[%s1392_s0 + $0x68] sm:$0xff] }
   0x7   :  { %v897_v15 = vld [vmem:[%s1392_s0 + $0x98] sm:$0xff]  ;;  %v890_v18 = vld [vmem:[%s1392_s0 + $0x60] sm:$0xff]  ;;  %v899_v23 = vld [vmem:[%s1392_s0 + $0xa8] sm:$0xff] }
   0x8   :  { %v905_v16 = vld [vmem:[%s1392_s0 + $0xd8] sm:$0xff]  ;;  %v898_v19 = vld [vmem:[%s1392_s0 + $0xa0] sm:$0xff]  ;;  %v907_v24 = vld [vmem:[%s1392_s0 + $0xe8] sm:$0xff] }
   0x9   :  { %v906_v20 = vld [vmem:[%s1392_s0 + $0xe0] sm:$0xff]  ;;  %v884_v25 = vld [vmem:[%s1392_s0 + $0x30] sm:$0xff]  ;;  %v885_v29 = vld [vmem:[%s1392_s0 + $0x38] sm:$0xff] }
   0xa   :  { %v892_v26 = vld [vmem:[%s1392_s0 + $0x70] sm:$0xff]  ;;  %v893_v30 = vld [vmem:[%s1392_s0 + $0x78] sm:$0xff]  ;;  %v1069_v33 = vld [vmem:[%s1393_s2] ss:$0 sm:$0xff] }
   0xb   :  { %v900_v27 = vld [vmem:[%s1392_s0 + $0xb0] sm:$0xff]  ;;  %v901_v31 = vld [vmem:[%s1392_s0 + $0xb8] sm:$0xff] }
   0xc   :  { %v908_v28 = vld [vmem:[%s1392_s0 + $0xf0] sm:$0xff]  ;;  %v909_v32 = vld [vmem:[%s1392_s0 + $0xf8] sm:$0xff] }
  0x15   :  { %847 = vmatmul.msk.bf16.gmra.mxu0 %vm251_vm0, %v879_v5  ;;  %855 = vmatmul.msk.bf16.gmra.mxu1 %vm251_vm0, %v887_v6 }
  0x16   :  { %863 = vmatmul.msk.bf16.gmra.mxu2 %vm251_vm0, %v895_v7  ;;  %871 = vmatmul.msk.bf16.gmra.mxu3 %vm251_vm0, %v903_v8 }
  0x25   :  { %848 = vmatmul.msk.bf16.gmra.mxu0 %vm251_vm0, %v880_v9  ;;  %856 = vmatmul.msk.bf16.gmra.mxu1 %vm251_vm0, %v888_v10 }
  0x26   :  { %864 = vmatmul.msk.bf16.gmra.mxu2 %vm251_vm0, %v896_v11  ;;  %872 = vmatmul.msk.bf16.gmra.mxu3 %vm251_vm0, %v904_v12 }
  0x35   :  { %849 = vmatmul.msk.bf16.gmra.mxu0 %vm251_vm0, %v881_v13  ;;  %857 = vmatmul.msk.bf16.gmra.mxu1 %vm251_vm0, %v889_v14 }
  0x36   :  { %865 = vmatmul.msk.bf16.gmra.mxu2 %vm251_vm0, %v897_v15  ;;  %873 = vmatmul.msk.bf16.gmra.mxu3 %vm251_vm0, %v905_v16 }
  0x45   :  { %850 = vmatmul.msk.bf16.gmra.mxu0 %vm251_vm0, %v882_v17  ;;  %858 = vmatmul.msk.bf16.gmra.mxu1 %vm251_vm0, %v890_v18 }
  0x46   :  { %866 = vmatmul.msk.bf16.gmra.mxu2 %vm251_vm0, %v898_v19  ;;  %874 = vmatmul.msk.bf16.gmra.mxu3 %vm251_vm0, %v906_v20 }
  0x55   :  { %851 = vmatmul.msk.bf16.gmra.mxu0 %vm251_vm0, %v883_v21  ;;  %859 = vmatmul.msk.bf16.gmra.mxu1 %vm251_vm0, %v891_v22 }
  0x56   :  { %867 = vmatmul.msk.bf16.gmra.mxu2 %vm251_vm0, %v899_v23  ;;  %875 = vmatmul.msk.bf16.gmra.mxu3 %vm251_vm0, %v907_v24 }
  0x65   :  { %852 = vmatmul.msk.bf16.gmra.mxu0 %vm251_vm0, %v884_v25  ;;  %860 = vmatmul.msk.bf16.gmra.mxu1 %vm251_vm0, %v892_v26 }
  0x66   :  { %868 = vmatmul.msk.bf16.gmra.mxu2 %vm251_vm0, %v900_v27  ;;  %876 = vmatmul.msk.bf16.gmra.mxu3 %vm251_vm0, %v908_v28 }
  0x75   :  { %853 = vmatmul.msk.bf16.gmra.mxu0 %vm251_vm0, %v885_v29  ;;  %861 = vmatmul.msk.bf16.gmra.mxu1 %vm251_vm0, %v893_v30 }
  0x76   :  { %869 = vmatmul.msk.bf16.gmra.mxu2 %vm251_vm0, %v901_v31  ;;  %877 = vmatmul.msk.bf16.gmra.mxu3 %vm251_vm0, %v909_v32 }
  0x82   :  { %v357_v34 = vpop.f32.mrf.mxu0  ;;  %v397_v35 = vpop.f32.mrf.mxu1 }
  0x83   :  { %v358_v36 = vadd.f32 %v1069_v33, %v357_v34  ;;  %v398_v37 = vadd.f32 %v1069_v33, %v397_v35 }
  0x85   :  { %v517_v38 = vmax.f32 %v358_v36, 0.0  ;;  %v533_v39 = vmax.f32 %v398_v37, 0.0 }
  0x87   :  { %v581_v40 = vpack.c.bf16 %v517_v38, %v517_v38  ;;  %v597_v41 = vpack.c.bf16 %v533_v39, %v533_v39 }
  0x89   :  { %646 = vst.msk [vmem:[%s1394_s3] sm:$0xf] %vm645_vm1, %v581_v40  ;;  %v437_v42 = vpop.f32.mrf.mxu2  ;;  %v477_v43 = vpop.f32.mrf.mxu3 }
  0x8a   :  { %662 = vst.msk [vmem:[%s1394_s3 + $0x40] sm:$0xf] %vm645_vm1, %v597_v41  ;;  %v438_v44 = vadd.f32 %v1069_v33, %v437_v42  ;;  %v478_v45 = vadd.f32 %v1069_v33, %v477_v43  ;;  %v359_v46 = vpop.f32.mrf.mxu0  ;;  %v399_v47 = vpop.f32.mrf.mxu1 }
  0x8b   :  { %v360_v48 = vadd.f32 %v1069_v33, %v359_v46  ;;  %v400_v49 = vadd.f32 %v1069_v33, %v399_v47 }
  0x8c   :  { %v549_v50 = vmax.f32 %v438_v44, 0.0  ;;  %v565_v51 = vmax.f32 %v478_v45, 0.0 }
  0x8d   :  { %v518_v52 = vmax.f32 %v360_v48, 0.0  ;;  %v534_v53 = vmax.f32 %v400_v49, 0.0 }
  0x8e   :  { %v613_v54 = vpack.c.bf16 %v549_v50, %v549_v50  ;;  %v629_v55 = vpack.c.bf16 %v565_v51, %v565_v51 }
  0x8f   :  { %v582_v56 = vpack.c.bf16 %v518_v52, %v518_v52  ;;  %v598_v57 = vpack.c.bf16 %v534_v53, %v534_v53 }
  0x90   :  { %678 = vst.msk [vmem:[%s1394_s3 + $0x80] sm:$0xf] %vm645_vm1, %v613_v54 }
  0x91   :  { %694 = vst.msk [vmem:[%s1394_s3 + $0xc0] sm:$0xf] %vm645_vm1, %v629_v55  ;;  %v439_v58 = vpop.f32.mrf.mxu2  ;;  %v479_v59 = vpop.f32.mrf.mxu3 }
  0x92   :  { %647 = vst.msk [vmem:[%s1394_s3 + $0x4] sm:$0xf] %vm645_vm1, %v582_v56  ;;  %v440_v60 = vadd.f32 %v1069_v33, %v439_v58  ;;  %v480_v61 = vadd.f32 %v1069_v33, %v479_v59  ;;  %v362_v62 = vpop.f32.mrf.mxu0  ;;  %v402_v63 = vpop.f32.mrf.mxu1 }
  0x93   :  { %663 = vst.msk [vmem:[%s1394_s3 + $0x44] sm:$0xf] %vm645_vm1, %v598_v57  ;;  %v363_v0 = vadd.f32 %v1069_v33, %v362_v62  ;;  %v403_v1 = vadd.f32 %v1069_v33, %v402_v63 }
  0x94   :  { %v550_v2 = vmax.f32 %v440_v60, 0.0  ;;  %v566_v3 = vmax.f32 %v480_v61, 0.0 }
  0x95   :  { %v519_v4 = vmax.f32 %v363_v0, 0.0  ;;  %v535_v5 = vmax.f32 %v403_v1, 0.0 }
  0x96   :  { %v614_v6 = vpack.c.bf16 %v550_v2, %v550_v2  ;;  %v630_v7 = vpack.c.bf16 %v566_v3, %v566_v3 }
  0x97   :  { %v583_v8 = vpack.c.bf16 %v519_v4, %v519_v4  ;;  %v599_v9 = vpack.c.bf16 %v535_v5, %v535_v5 }
  0x98   :  { %679 = vst.msk [vmem:[%s1394_s3 + $0x84] sm:$0xf] %vm645_vm1, %v614_v6 }
  0x99   :  { %695 = vst.msk [vmem:[%s1394_s3 + $0xc4] sm:$0xf] %vm645_vm1, %v630_v7  ;;  %v442_v10 = vpop.f32.mrf.mxu2  ;;  %v482_v11 = vpop.f32.mrf.mxu3 }
  0x9a   :  { %648 = vst.msk [vmem:[%s1394_s3 + $0x8] sm:$0xf] %vm645_vm1, %v583_v8  ;;  %v443_v12 = vadd.f32 %v1069_v33, %v442_v10  ;;  %v483_v13 = vadd.f32 %v1069_v33, %v482_v11  ;;  %v364_v14 = vpop.f32.mrf.mxu0  ;;  %v404_v15 = vpop.f32.mrf.mxu1 }
  0x9b   :  { %664 = vst.msk [vmem:[%s1394_s3 + $0x48] sm:$0xf] %vm645_vm1, %v599_v9  ;;  %v365_v16 = vadd.f32 %v1069_v33, %v364_v14  ;;  %v405_v17 = vadd.f32 %v1069_v33, %v404_v15 }
  0x9c   :  { %v551_v18 = vmax.f32 %v443_v12, 0.0  ;;  %v567_v19 = vmax.f32 %v483_v13, 0.0 }
  0x9d   :  { %v520_v20 = vmax.f32 %v365_v16, 0.0  ;;  %v536_v21 = vmax.f32 %v405_v17, 0.0 }
  0x9e   :  { %v615_v22 = vpack.c.bf16 %v551_v18, %v551_v18  ;;  %v631_v23 = vpack.c.bf16 %v567_v19, %v567_v19 }
  0x9f   :  { %v584_v24 = vpack.c.bf16 %v520_v20, %v520_v20  ;;  %v600_v25 = vpack.c.bf16 %v536_v21, %v536_v21 }
  0xa0   :  { %680 = vst.msk [vmem:[%s1394_s3 + $0x88] sm:$0xf] %vm645_vm1, %v615_v22 }
  0xa1   :  { %696 = vst.msk [vmem:[%s1394_s3 + $0xc8] sm:$0xf] %vm645_vm1, %v631_v23  ;;  %v444_v26 = vpop.f32.mrf.mxu2  ;;  %v484_v27 = vpop.f32.mrf.mxu3 }
  0xa2   :  { %649 = vst.msk [vmem:[%s1394_s3 + $0xc] sm:$0xf] %vm645_vm1, %v584_v24  ;;  %v445_v28 = vadd.f32 %v1069_v33, %v444_v26  ;;  %v485_v29 = vadd.f32 %v1069_v33, %v484_v27  ;;  %v367_v30 = vpop.f32.mrf.mxu0  ;;  %v407_v31 = vpop.f32.mrf.mxu1 }
  0xa3   :  { %665 = vst.msk [vmem:[%s1394_s3 + $0x4c] sm:$0xf] %vm645_vm1, %v600_v25  ;;  %v368_v32 = vadd.f32 %v1069_v33, %v367_v30  ;;  %v408_v34 = vadd.f32 %v1069_v33, %v407_v31 }
  0xa4   :  { %v552_v35 = vmax.f32 %v445_v28, 0.0  ;;  %v568_v36 = vmax.f32 %v485_v29, 0.0 }
  0xa5   :  { %v521_v37 = vmax.f32 %v368_v32, 0.0  ;;  %v537_v38 = vmax.f32 %v408_v34, 0.0 }
  0xa6   :  { %v616_v39 = vpack.c.bf16 %v552_v35, %v552_v35  ;;  %v632_v40 = vpack.c.bf16 %v568_v36, %v568_v36 }
  0xa7   :  { %v585_v41 = vpack.c.bf16 %v521_v37, %v521_v37  ;;  %v601_v42 = vpack.c.bf16 %v537_v38, %v537_v38 }
  0xa8   :  { %681 = vst.msk [vmem:[%s1394_s3 + $0x8c] sm:$0xf] %vm645_vm1, %v616_v39 }
  0xa9   :  { %697 = vst.msk [vmem:[%s1394_s3 + $0xcc] sm:$0xf] %vm645_vm1, %v632_v40  ;;  %v447_v43 = vpop.f32.mrf.mxu2  ;;  %v487_v44 = vpop.f32.mrf.mxu3 }
  0xaa   :  { %650 = vst.msk [vmem:[%s1394_s3 + $0x10] sm:$0xf] %vm645_vm1, %v585_v41  ;;  %v448_v45 = vadd.f32 %v1069_v33, %v447_v43  ;;  %v488_v46 = vadd.f32 %v1069_v33, %v487_v44  ;;  %v369_v47 = vpop.f32.mrf.mxu0  ;;  %v409_v48 = vpop.f32.mrf.mxu1 }
  0xab   :  { %666 = vst.msk [vmem:[%s1394_s3 + $0x50] sm:$0xf] %vm645_vm1, %v601_v42  ;;  %v370_v49 = vadd.f32 %v1069_v33, %v369_v47  ;;  %v410_v50 = vadd.f32 %v1069_v33, %v409_v48 }
  0xac   :  { %v553_v51 = vmax.f32 %v448_v45, 0.0  ;;  %v569_v52 = vmax.f32 %v488_v46, 0.0 }
  0xad   :  { %v522_v53 = vmax.f32 %v370_v49, 0.0  ;;  %v538_v54 = vmax.f32 %v410_v50, 0.0 }
  0xae   :  { %v617_v55 = vpack.c.bf16 %v553_v51, %v553_v51  ;;  %v633_v56 = vpack.c.bf16 %v569_v52, %v569_v52 }
  0xaf   :  { %v586_v57 = vpack.c.bf16 %v522_v53, %v522_v53  ;;  %v602_v58 = vpack.c.bf16 %v538_v54, %v538_v54 }
  0xb0   :  { %682 = vst.msk [vmem:[%s1394_s3 + $0x90] sm:$0xf] %vm645_vm1, %v617_v55 }
  0xb1   :  { %698 = vst.msk [vmem:[%s1394_s3 + $0xd0] sm:$0xf] %vm645_vm1, %v633_v56  ;;  %v449_v59 = vpop.f32.mrf.mxu2  ;;  %v489_v60 = vpop.f32.mrf.mxu3 }
  0xb2   :  { %651 = vst.msk [vmem:[%s1394_s3 + $0x14] sm:$0xf] %vm645_vm1, %v586_v57  ;;  %v450_v61 = vadd.f32 %v1069_v33, %v449_v59  ;;  %v490_v62 = vadd.f32 %v1069_v33, %v489_v60  ;;  %v372_v63 = vpop.f32.mrf.mxu0  ;;  %v412_v0 = vpop.f32.mrf.mxu1 }
  0xb3   :  { %667 = vst.msk [vmem:[%s1394_s3 + $0x54] sm:$0xf] %vm645_vm1, %v602_v58  ;;  %v373_v1 = vadd.f32 %v1069_v33, %v372_v63  ;;  %v413_v2 = vadd.f32 %v1069_v33, %v412_v0 }
  0xb4   :  { %v554_v3 = vmax.f32 %v450_v61, 0.0  ;;  %v570_v4 = vmax.f32 %v490_v62, 0.0 }
  0xb5   :  { %v523_v5 = vmax.f32 %v373_v1, 0.0  ;;  %v539_v6 = vmax.f32 %v413_v2, 0.0 }
  0xb6   :  { %v618_v7 = vpack.c.bf16 %v554_v3, %v554_v3  ;;  %v634_v8 = vpack.c.bf16 %v570_v4, %v570_v4 }
  0xb7   :  { %v587_v9 = vpack.c.bf16 %v523_v5, %v523_v5  ;;  %v603_v10 = vpack.c.bf16 %v539_v6, %v539_v6 }
  0xb8   :  { %683 = vst.msk [vmem:[%s1394_s3 + $0x94] sm:$0xf] %vm645_vm1, %v618_v7 }
  0xb9   :  { %699 = vst.msk [vmem:[%s1394_s3 + $0xd4] sm:$0xf] %vm645_vm1, %v634_v8  ;;  %v452_v11 = vpop.f32.mrf.mxu2  ;;  %v492_v12 = vpop.f32.mrf.mxu3 }
  0xba   :  { %652 = vst.msk [vmem:[%s1394_s3 + $0x18] sm:$0xf] %vm645_vm1, %v587_v9  ;;  %v453_v13 = vadd.f32 %v1069_v33, %v452_v11  ;;  %v493_v14 = vadd.f32 %v1069_v33, %v492_v12  ;;  %v374_v15 = vpop.f32.mrf.mxu0  ;;  %v414_v16 = vpop.f32.mrf.mxu1 }
  0xbb   :  { %668 = vst.msk [vmem:[%s1394_s3 + $0x58] sm:$0xf] %vm645_vm1, %v603_v10  ;;  %v375_v17 = vadd.f32 %v1069_v33, %v374_v15  ;;  %v415_v18 = vadd.f32 %v1069_v33, %v414_v16 }
  0xbc   :  { %v555_v19 = vmax.f32 %v453_v13, 0.0  ;;  %v571_v20 = vmax.f32 %v493_v14, 0.0 }
  0xbd   :  { %v524_v21 = vmax.f32 %v375_v17, 0.0  ;;  %v540_v22 = vmax.f32 %v415_v18, 0.0 }
  0xbe   :  { %v619_v23 = vpack.c.bf16 %v555_v19, %v555_v19  ;;  %v635_v24 = vpack.c.bf16 %v571_v20, %v571_v20 }
  0xbf   :  { %v588_v25 = vpack.c.bf16 %v524_v21, %v524_v21  ;;  %v604_v26 = vpack.c.bf16 %v540_v22, %v540_v22 }
  0xc0   :  { %684 = vst.msk [vmem:[%s1394_s3 + $0x98] sm:$0xf] %vm645_vm1, %v619_v23 }
  0xc1   :  { %700 = vst.msk [vmem:[%s1394_s3 + $0xd8] sm:$0xf] %vm645_vm1, %v635_v24  ;;  %v454_v27 = vpop.f32.mrf.mxu2  ;;  %v494_v28 = vpop.f32.mrf.mxu3 }
  0xc2   :  { %653 = vst.msk [vmem:[%s1394_s3 + $0x1c] sm:$0xf] %vm645_vm1, %v588_v25  ;;  %v455_v29 = vadd.f32 %v1069_v33, %v454_v27  ;;  %v495_v30 = vadd.f32 %v1069_v33, %v494_v28  ;;  %v377_v31 = vpop.f32.mrf.mxu0  ;;  %v417_v32 = vpop.f32.mrf.mxu1 }
  0xc3   :  { %669 = vst.msk [vmem:[%s1394_s3 + $0x5c] sm:$0xf] %vm645_vm1, %v604_v26  ;;  %v378_v34 = vadd.f32 %v1069_v33, %v377_v31  ;;  %v418_v35 = vadd.f32 %v1069_v33, %v417_v32 }
  0xc4   :  { %v556_v36 = vmax.f32 %v455_v29, 0.0  ;;  %v572_v37 = vmax.f32 %v495_v30, 0.0 }
  0xc5   :  { %v525_v38 = vmax.f32 %v378_v34, 0.0  ;;  %v541_v39 = vmax.f32 %v418_v35, 0.0 }
  0xc6   :  { %v620_v40 = vpack.c.bf16 %v556_v36, %v556_v36  ;;  %v636_v41 = vpack.c.bf16 %v572_v37, %v572_v37 }
  0xc7   :  { %v589_v42 = vpack.c.bf16 %v525_v38, %v525_v38  ;;  %v605_v43 = vpack.c.bf16 %v541_v39, %v541_v39 }
  0xc8   :  { %685 = vst.msk [vmem:[%s1394_s3 + $0x9c] sm:$0xf] %vm645_vm1, %v620_v40 }
  0xc9   :  { %701 = vst.msk [vmem:[%s1394_s3 + $0xdc] sm:$0xf] %vm645_vm1, %v636_v41  ;;  %v457_v44 = vpop.f32.mrf.mxu2  ;;  %v497_v45 = vpop.f32.mrf.mxu3 }
  0xca   :  { %654 = vst.msk [vmem:[%s1394_s3 + $0x20] sm:$0xf] %vm645_vm1, %v589_v42  ;;  %v458_v46 = vadd.f32 %v1069_v33, %v457_v44  ;;  %v498_v47 = vadd.f32 %v1069_v33, %v497_v45  ;;  %v379_v48 = vpop.f32.mrf.mxu0  ;;  %v419_v49 = vpop.f32.mrf.mxu1 }
  0xcb   :  { %670 = vst.msk [vmem:[%s1394_s3 + $0x60] sm:$0xf] %vm645_vm1, %v605_v43  ;;  %v380_v50 = vadd.f32 %v1069_v33, %v379_v48  ;;  %v420_v51 = vadd.f32 %v1069_v33, %v419_v49 }
  0xcc   :  { %v557_v52 = vmax.f32 %v458_v46, 0.0  ;;  %v573_v53 = vmax.f32 %v498_v47, 0.0 }
  0xcd   :  { %v526_v54 = vmax.f32 %v380_v50, 0.0  ;;  %v542_v55 = vmax.f32 %v420_v51, 0.0 }
  0xce   :  { %v621_v56 = vpack.c.bf16 %v557_v52, %v557_v52  ;;  %v637_v57 = vpack.c.bf16 %v573_v53, %v573_v53 }
  0xcf   :  { %v590_v58 = vpack.c.bf16 %v526_v54, %v526_v54  ;;  %v606_v59 = vpack.c.bf16 %v542_v55, %v542_v55 }
  0xd0   :  { %686 = vst.msk [vmem:[%s1394_s3 + $0xa0] sm:$0xf] %vm645_vm1, %v621_v56 }
  0xd1   :  { %702 = vst.msk [vmem:[%s1394_s3 + $0xe0] sm:$0xf] %vm645_vm1, %v637_v57  ;;  %v459_v60 = vpop.f32.mrf.mxu2  ;;  %v499_v61 = vpop.f32.mrf.mxu3 }
  0xd2   :  { %655 = vst.msk [vmem:[%s1394_s3 + $0x24] sm:$0xf] %vm645_vm1, %v590_v58  ;;  %v460_v62 = vadd.f32 %v1069_v33, %v459_v60  ;;  %v500_v63 = vadd.f32 %v1069_v33, %v499_v61  ;;  %v382_v0 = vpop.f32.mrf.mxu0  ;;  %v422_v1 = vpop.f32.mrf.mxu1 }
  0xd3   :  { %671 = vst.msk [vmem:[%s1394_s3 + $0x64] sm:$0xf] %vm645_vm1, %v606_v59  ;;  %v383_v2 = vadd.f32 %v1069_v33, %v382_v0  ;;  %v423_v3 = vadd.f32 %v1069_v33, %v422_v1 }
  0xd4   :  { %v558_v4 = vmax.f32 %v460_v62, 0.0  ;;  %v574_v5 = vmax.f32 %v500_v63, 0.0 }
  0xd5   :  { %v527_v6 = vmax.f32 %v383_v2, 0.0  ;;  %v543_v7 = vmax.f32 %v423_v3, 0.0 }
  0xd6   :  { %v622_v8 = vpack.c.bf16 %v558_v4, %v558_v4  ;;  %v638_v9 = vpack.c.bf16 %v574_v5, %v574_v5 }
  0xd7   :  { %v591_v10 = vpack.c.bf16 %v527_v6, %v527_v6  ;;  %v607_v11 = vpack.c.bf16 %v543_v7, %v543_v7 }
  0xd8   :  { %687 = vst.msk [vmem:[%s1394_s3 + $0xa4] sm:$0xf] %vm645_vm1, %v622_v8 }
  0xd9   :  { %703 = vst.msk [vmem:[%s1394_s3 + $0xe4] sm:$0xf] %vm645_vm1, %v638_v9  ;;  %v462_v12 = vpop.f32.mrf.mxu2  ;;  %v502_v13 = vpop.f32.mrf.mxu3 }
  0xda   :  { %656 = vst.msk [vmem:[%s1394_s3 + $0x28] sm:$0xf] %vm645_vm1, %v591_v10  ;;  %v463_v14 = vadd.f32 %v1069_v33, %v462_v12  ;;  %v503_v15 = vadd.f32 %v1069_v33, %v502_v13  ;;  %v384_v16 = vpop.f32.mrf.mxu0  ;;  %v424_v17 = vpop.f32.mrf.mxu1 }
  0xdb   :  { %672 = vst.msk [vmem:[%s1394_s3 + $0x68] sm:$0xf] %vm645_vm1, %v607_v11  ;;  %v385_v18 = vadd.f32 %v1069_v33, %v384_v16  ;;  %v425_v19 = vadd.f32 %v1069_v33, %v424_v17 }
  0xdc   :  { %v559_v20 = vmax.f32 %v463_v14, 0.0  ;;  %v575_v21 = vmax.f32 %v503_v15, 0.0 }
  0xdd   :  { %v528_v22 = vmax.f32 %v385_v18, 0.0  ;;  %v544_v23 = vmax.f32 %v425_v19, 0.0 }
  0xde   :  { %v623_v24 = vpack.c.bf16 %v559_v20, %v559_v20  ;;  %v639_v25 = vpack.c.bf16 %v575_v21, %v575_v21 }
  0xdf   :  { %v592_v26 = vpack.c.bf16 %v528_v22, %v528_v22  ;;  %v608_v27 = vpack.c.bf16 %v544_v23, %v544_v23 }
  0xe0   :  { %688 = vst.msk [vmem:[%s1394_s3 + $0xa8] sm:$0xf] %vm645_vm1, %v623_v24 }
  0xe1   :  { %704 = vst.msk [vmem:[%s1394_s3 + $0xe8] sm:$0xf] %vm645_vm1, %v639_v25  ;;  %v464_v28 = vpop.f32.mrf.mxu2  ;;  %v504_v29 = vpop.f32.mrf.mxu3 }
  0xe2   :  { %657 = vst.msk [vmem:[%s1394_s3 + $0x2c] sm:$0xf] %vm645_vm1, %v592_v26  ;;  %v465_v30 = vadd.f32 %v1069_v33, %v464_v28  ;;  %v505_v31 = vadd.f32 %v1069_v33, %v504_v29  ;;  %v387_v32 = vpop.f32.mrf.mxu0  ;;  %v427_v34 = vpop.f32.mrf.mxu1 }
  0xe3   :  { %673 = vst.msk [vmem:[%s1394_s3 + $0x6c] sm:$0xf] %vm645_vm1, %v608_v27  ;;  %v388_v35 = vadd.f32 %v1069_v33, %v387_v32  ;;  %v428_v36 = vadd.f32 %v1069_v33, %v427_v34 }
  0xe4   :  { %v560_v37 = vmax.f32 %v465_v30, 0.0  ;;  %v576_v38 = vmax.f32 %v505_v31, 0.0 }
  0xe5   :  { %v529_v39 = vmax.f32 %v388_v35, 0.0  ;;  %v545_v40 = vmax.f32 %v428_v36, 0.0 }
  0xe6   :  { %v624_v41 = vpack.c.bf16 %v560_v37, %v560_v37  ;;  %v640_v42 = vpack.c.bf16 %v576_v38, %v576_v38 }
  0xe7   :  { %v593_v43 = vpack.c.bf16 %v529_v39, %v529_v39  ;;  %v609_v44 = vpack.c.bf16 %v545_v40, %v545_v40 }
  0xe8   :  { %689 = vst.msk [vmem:[%s1394_s3 + $0xac] sm:$0xf] %vm645_vm1, %v624_v41 }
  0xe9   :  { %705 = vst.msk [vmem:[%s1394_s3 + $0xec] sm:$0xf] %vm645_vm1, %v640_v42  ;;  %v467_v45 = vpop.f32.mrf.mxu2  ;;  %v507_v46 = vpop.f32.mrf.mxu3 }
  0xea   :  { %658 = vst.msk [vmem:[%s1394_s3 + $0x30] sm:$0xf] %vm645_vm1, %v593_v43  ;;  %v468_v47 = vadd.f32 %v1069_v33, %v467_v45  ;;  %v508_v48 = vadd.f32 %v1069_v33, %v507_v46  ;;  %v389_v49 = vpop.f32.mrf.mxu0  ;;  %v429_v50 = vpop.f32.mrf.mxu1 }
  0xeb   :  { %674 = vst.msk [vmem:[%s1394_s3 + $0x70] sm:$0xf] %vm645_vm1, %v609_v44  ;;  %v390_v51 = vadd.f32 %v1069_v33, %v389_v49  ;;  %v430_v52 = vadd.f32 %v1069_v33, %v429_v50 }
  0xec   :  { %v561_v53 = vmax.f32 %v468_v47, 0.0  ;;  %v577_v54 = vmax.f32 %v508_v48, 0.0 }
  0xed   :  { %v530_v55 = vmax.f32 %v390_v51, 0.0  ;;  %v546_v56 = vmax.f32 %v430_v52, 0.0 }
  0xee   :  { %v625_v57 = vpack.c.bf16 %v561_v53, %v561_v53  ;;  %v641_v58 = vpack.c.bf16 %v577_v54, %v577_v54 }
  0xef   :  { %v594_v59 = vpack.c.bf16 %v530_v55, %v530_v55  ;;  %v610_v60 = vpack.c.bf16 %v546_v56, %v546_v56 }
  0xf0   :  { %690 = vst.msk [vmem:[%s1394_s3 + $0xb0] sm:$0xf] %vm645_vm1, %v625_v57 }
  0xf1   :  { %706 = vst.msk [vmem:[%s1394_s3 + $0xf0] sm:$0xf] %vm645_vm1, %v641_v58  ;;  %v469_v61 = vpop.f32.mrf.mxu2  ;;  %v509_v62 = vpop.f32.mrf.mxu3 }
  0xf2   :  { %659 = vst.msk [vmem:[%s1394_s3 + $0x34] sm:$0xf] %vm645_vm1, %v594_v59  ;;  %v470_v63 = vadd.f32 %v1069_v33, %v469_v61  ;;  %v510_v0 = vadd.f32 %v1069_v33, %v509_v62  ;;  %v392_v1 = vpop.f32.mrf.mxu0  ;;  %v432_v2 = vpop.f32.mrf.mxu1 }
  0xf3   :  { %675 = vst.msk [vmem:[%s1394_s3 + $0x74] sm:$0xf] %vm645_vm1, %v610_v60  ;;  %v393_v3 = vadd.f32 %v1069_v33, %v392_v1  ;;  %v433_v4 = vadd.f32 %v1069_v33, %v432_v2 }
  0xf4   :  { %v562_v5 = vmax.f32 %v470_v63, 0.0  ;;  %v578_v6 = vmax.f32 %v510_v0, 0.0 }
  0xf5   :  { %v531_v7 = vmax.f32 %v393_v3, 0.0  ;;  %v547_v8 = vmax.f32 %v433_v4, 0.0 }
  0xf6   :  { %v626_v9 = vpack.c.bf16 %v562_v5, %v562_v5  ;;  %v642_v10 = vpack.c.bf16 %v578_v6, %v578_v6 }
  0xf7   :  { %v595_v11 = vpack.c.bf16 %v531_v7, %v531_v7  ;;  %v611_v12 = vpack.c.bf16 %v547_v8, %v547_v8 }
  0xf8   :  { %691 = vst.msk [vmem:[%s1394_s3 + $0xb4] sm:$0xf] %vm645_vm1, %v626_v9 }
  0xf9   :  { %707 = vst.msk [vmem:[%s1394_s3 + $0xf4] sm:$0xf] %vm645_vm1, %v642_v10  ;;  %v472_v13 = vpop.f32.mrf.mxu2  ;;  %v512_v14 = vpop.f32.mrf.mxu3 }
  0xfa   :  { %660 = vst.msk [vmem:[%s1394_s3 + $0x38] sm:$0xf] %vm645_vm1, %v595_v11  ;;  %v473_v15 = vadd.f32 %v1069_v33, %v472_v13  ;;  %v513_v16 = vadd.f32 %v1069_v33, %v512_v14  ;;  %v394_v17 = vpop.f32.mrf.mxu0  ;;  %v434_v18 = vpop.f32.mrf.mxu1 }
  0xfb   :  { %676 = vst.msk [vmem:[%s1394_s3 + $0x78] sm:$0xf] %vm645_vm1, %v611_v12  ;;  %v395_v19 = vadd.f32 %v1069_v33, %v394_v17  ;;  %v435_v20 = vadd.f32 %v1069_v33, %v434_v18 }
  0xfc   :  { %v563_v21 = vmax.f32 %v473_v15, 0.0  ;;  %v579_v22 = vmax.f32 %v513_v16, 0.0 }
  0xfd   :  { %v532_v23 = vmax.f32 %v395_v19, 0.0  ;;  %v548_v24 = vmax.f32 %v435_v20, 0.0 }
  0xfe   :  { %v627_v25 = vpack.c.bf16 %v563_v21, %v563_v21  ;;  %v643_v26 = vpack.c.bf16 %v579_v22, %v579_v22 }
  0xff   :  { %v596_v27 = vpack.c.bf16 %v532_v23, %v532_v23  ;;  %v612_v28 = vpack.c.bf16 %v548_v24, %v548_v24 }
 0x100   :  { %692 = vst.msk [vmem:[%s1394_s3 + $0xb8] sm:$0xf] %vm645_vm1, %v627_v25 }
 0x101   :  { %708 = vst.msk [vmem:[%s1394_s3 + $0xf8] sm:$0xf] %vm645_vm1, %v643_v26  ;;  %v474_v29 = vpop.f32.mrf.mxu2  ;;  %v514_v30 = vpop.f32.mrf.mxu3 }
 0x102   :  { %661 = vst.msk [vmem:[%s1394_s3 + $0x3c] sm:$0xf] %vm645_vm1, %v596_v27  ;;  %v475_v31 = vadd.f32 %v1069_v33, %v474_v29  ;;  %v515_v32 = vadd.f32 %v1069_v33, %v514_v30 }
 0x103   :  { %677 = vst.msk [vmem:[%s1394_s3 + $0x7c] sm:$0xf] %vm645_vm1, %v612_v28 }
 0x104   :  { %v564_v34 = vmax.f32 %v475_v31, 0.0  ;;  %v580_v35 = vmax.f32 %v515_v32, 0.0 }
 0x106   :  { %v628_v36 = vpack.c.bf16 %v564_v34, %v564_v34  ;;  %v644_v37 = vpack.c.bf16 %v580_v35, %v580_v35 }
 0x108   :  { %693 = vst.msk [vmem:[%s1394_s3 + $0xbc] sm:$0xf] %vm645_vm1, %v628_v36 }
 0x109   :  { %709 = vst.msk [vmem:[%s1394_s3 + $0xfc] sm:$0xf] %vm645_vm1, %v644_v37 }

// kernel: bottleneck_forward.4
= control target key start
LH: loop header
LB: loop body
LE: loop exit
PB: predicated region body
PF: predicated region fallthrough
CT: control target
= control target key end

     0   :  { %s2122_s12 = smov 0   ;;  %s2124_s13 = smov 0   ;;  %s2591_s0 = inlined_call_operand.vmem [shape: bf16[2,2,9,2,9,8], index: 0, kind: input, shape index: {}]   ;;  %s2592_s1 = inlined_call_operand.vmem [shape: bf16[3,3,8,8], index: 1, kind: input, shape index: {}]   ;;  %s2593_s2 = inlined_call_operand.vmem [shape: f32[1,8], index: 2, kind: input, shape index: {}]   ;;  %s2594_s3 = inlined_call_operand.vmem [shape: bf16[2,8,8,8], index: 3, kind: output, shape index: {}]  }
   0x1   :  { %s2126_s14 = smov 0   ;;  %s2128_s15 = smov 0  }
   0x2   :  { %s2130_s16 = smov 0  }
   0x3 LB: > { %s25_s17 = sadd.s32 1, %s2096_s15  ;;  %p39_p1 = scmp.ne.s32.totalorder %s2088_s13, %s2084_s12  ;;  %s2100_s16 = sphi %s2130_s16, %s13_s16   ;;  %s2096_s15 = sphi %s2128_s15, %s2600_s15   ;;  %s2092_s14 = sphi %s2126_s14, %s2599_s14   ;;  %s2088_s13 = sphi %s2124_s13, %s2598_s13   ;;  %s2084_s12 = sphi %s2122_s12, %s2597_s12  }
   0x4   : > { %p27_p0 = scmp.ge.s32.totalorder %s25_s17, 2  ;;  %p40_p2 = scmp.eq.s32.totalorder %s2100_s16, 0 }
   0x5   : > { %s32_s19 = sadd.s32 1, %s2088_s13  ;;  %p1771_p5 = scmp.ge.s32.totalorder %s2100_s16, 2 }
   0x6   : > { %s2602_s17 = smov (%p27_p0, %s25_s17), 0  ;;  %p41_p3 = por %p40_p2, %p39_p1 }
   0x7   : > { %s29_s18 = ssub.s32 %s2096_s15, %s2602_s17  ;;  %158 = sbr.rel (%p1771_p5) target bundleno = 53 (0x35), region = 24 }
   0x8   : > { %p30_p4 = scmp.eq.s32.totalorder %s29_s18, 0 }
   0xa   : > { %s2157_s20 = scalar_select %p30_p4, %s2088_s13, %s32_s19  }
   0xc   : > { %161 = sbr.rel (!%p41_p3) target bundleno = 53 (0x35), region = 28  ;;  %s163_s21 = sand.u32 (%p41_p3), 1, %s2088_s13  }
   0xd   : > { %s2019_s22 = smul.u32 (%p41_p3), 144, %s2096_s15 }
   0xe   : > { %s2018_s23 = smul.u32 (%p41_p3), 288, %s163_s21 }
   0xf   : > { %s2165_s26 = scalar_lea.vmem (%p41_p3), %s2591_s0, %s2019_s22 }
  0x10   : > { %v185_v0 = vld [vmem:[%s2165_s26] sm:$0xff] (%p41_p3)   ;;  %v189_v1 = vld [vmem:[%s2165_s26 + $0x8] sm:$0xff] (%p41_p3)   ;;  %v193_v2 = vld [vmem:[%s2165_s26 + $0x10] sm:$0xff] (%p41_p3)   ;;  %s2170_s27 = scalar_lea.vmem (%p41_p3), [#allocation2], %s2018_s23 }
  0x11   : > { %186 = vst [vmem:[%s2170_s27] sm:$0xff] %v185_v0   ;;  %v197_v3 = vld [vmem:[%s2165_s26 + $0x18] sm:$0xff]   ;;  %v201_v4 = vld [vmem:[%s2165_s26 + $0x20] sm:$0xff]   ;;  %v205_v5 = vld [vmem:[%s2165_s26 + $0x28] sm:$0xff]  }
  0x12   : > { %190 = vst [vmem:[%s2170_s27 + $0x8] sm:$0xff] %v189_v1   ;;  %v209_v6 = vld [vmem:[%s2165_s26 + $0x30] sm:$0xff]   ;;  %v213_v7 = vld [vmem:[%s2165_s26 + $0x38] sm:$0xff]   ;;  %v217_v8 = vld [vmem:[%s2165_s26 + $0x40] sm:$0xff]  }
  0x13   : > { %194 = vst [vmem:[%s2170_s27 + $0x10] sm:$0xff] %v193_v2   ;;  %v221_v9 = vld [vmem:[%s2165_s26 + $0x48] sm:$0xff]   ;;  %v225_v10 = vld [vmem:[%s2165_s26 + $0x50] sm:$0xff]   ;;  %v229_v11 = vld [vmem:[%s2165_s26 + $0x58] sm:$0xff]  }
  0x14   : > { %198 = vst [vmem:[%s2170_s27 + $0x18] sm:$0xff] %v197_v3   ;;  %v233_v12 = vld [vmem:[%s2165_s26 + $0x60] sm:$0xff]   ;;  %v237_v13 = vld [vmem:[%s2165_s26 + $0x68] sm:$0xff]   ;;  %v241_v14 = vld [vmem:[%s2165_s26 + $0x70] sm:$0xff]  }
  0x15   : > { %202 = vst [vmem:[%s2170_s27 + $0x20] sm:$0xff] %v201_v4   ;;  %v245_v15 = vld [vmem:[%s2165_s26 + $0x78] sm:$0xff]   ;;  %v249_v16 = vld [vmem:[%s2165_s26 + $0x80] sm:$0xff]   ;;  %v253_v17 = vld [vmem:[%s2165_s26 + $0x88] sm:$0xff]  }
  0x16   : > { %206 = vst [vmem:[%s2170_s27 + $0x28] sm:$0xff] %v205_v5   ;;  %v257_v18 = vld [vmem:[%s2165_s26 + $0x120] sm:$0xff]   ;;  %v261_v19 = vld [vmem:[%s2165_s26 + $0x128] sm:$0xff]   ;;  %v265_v20 = vld [vmem:[%s2165_s26 + $0x130] sm:$0xff]  }
  0x17   : > { %210 = vst [vmem:[%s2170_s27 + $0x30] sm:$0xff] %v209_v6   ;;  %v269_v21 = vld [vmem:[%s2165_s26 + $0x138] sm:$0xff]   ;;  %v273_v22 = vld [vmem:[%s2165_s26 + $0x140] sm:$0xff]   ;;  %v277_v23 = vld [vmem:[%s2165_s26 + $0x148] sm:$0xff]  }
  0x18   : > { %214 = vst [vmem:[%s2170_s27 + $0x38] sm:$0xff] %v213_v7   ;;  %v281_v24 = vld [vmem:[%s2165_s26 + $0x150] sm:$0xff]   ;;  %v285_v25 = vld [vmem:[%s2165_s26 + $0x158] sm:$0xff]   ;;  %v289_v26 = vld [vmem:[%s2165_s26 + $0x160] sm:$0xff]  }
  0x19   : > { %218 = vst [vmem:[%s2170_s27 + $0x40] sm:$0xff] %v217_v8   ;;  %v293_v27 = vld [vmem:[%s2165_s26 + $0x168] sm:$0xff]   ;;  %v297_v28 = vld [vmem:[%s2165_s26 + $0x170] sm:$0xff]   ;;  %v301_v29 = vld [vmem:[%s2165_s26 + $0x178] sm:$0xff]  }
  0x1a   : > { %222 = vst [vmem:[%s2170_s27 + $0x48] sm:$0xff] %v221_v9   ;;  %v305_v30 = vld [vmem:[%s2165_s26 + $0x180] sm:$0xff]   ;;  %v309_v31 = vld [vmem:[%s2165_s26 + $0x188] sm:$0xff]   ;;  %v313_v32 = vld [vmem:[%s2165_s26 + $0x190] sm:$0xff]  }
  0x1b   : > { %226 = vst [vmem:[%s2170_s27 + $0x50] sm:$0xff] %v225_v10   ;;  %v317_v33 = vld [vmem:[%s2165_s26 + $0x198] sm:$0xff]   ;;  %v321_v34 = vld [vmem:[%s2165_s26 + $0x1a0] sm:$0xff]   ;;  %v325_v35 = vld [vmem:[%s2165_s26 + $0x1a8] sm:$0xff]  }
  0x1c   : > { %230 = vst [vmem:[%s2170_s27 + $0x58] sm:$0xff] %v229_v11  }
  0x1d   : > { %234 = vst [vmem:[%s2170_s27 + $0x60] sm:$0xff] %v233_v12  }
  0x1e   : > { %238 = vst [vmem:[%s2170_s27 + $0x68] sm:$0xff] %v237_v13  }
  0x1f   : > { %242 = vst [vmem:[%s2170_s27 + $0x70] sm:$0xff] %v241_v14  }
  0x20   : > { %246 = vst [vmem:[%s2170_s27 + $0x78] sm:$0xff] %v245_v15  }
  0x21   : > { %250 = vst [vmem:[%s2170_s27 + $0x80] sm:$0xff] %v249_v16  }
  0x22   : > { %254 = vst [vmem:[%s2170_s27 + $0x88] sm:$0xff] %v253_v17  }
  0x23   : > { %258 = vst [vmem:[%s2170_s27 + $0x90] sm:$0xff] %v257_v18  }
  0x24   : > { %262 = vst [vmem:[%s2170_s27 + $0x98] sm:$0xff] %v261_v19  }
  0x25   : > { %266 = vst [vmem:[%s2170_s27 + $0xa0] sm:$0xff] %v265_v20  }
  0x26   : > { %270 = vst [vmem:[%s2170_s27 + $0xa8] sm:$0xff] %v269_v21  }
  0x27   : > { %274 = vst [vmem:[%s2170_s27 + $0xb0] sm:$0xff] %v273_v22  }
  0x28   : > { %278 = vst [vmem:[%s2170_s27 + $0xb8] sm:$0xff] %v277_v23  }
  0x29   : > { %282 = vst [vmem:[%s2170_s27 + $0xc0] sm:$0xff] %v281_v24  }
  0x2a   : > { %286 = vst [vmem:[%s2170_s27 + $0xc8] sm:$0xff] %v285_v25  }
  0x2b   : > { %290 = vst [vmem:[%s2170_s27 + $0xd0] sm:$0xff] %v289_v26  }
  0x2c   : > { %294 = vst [vmem:[%s2170_s27 + $0xd8] sm:$0xff] %v293_v27  }
  0x2d   : > { %298 = vst [vmem:[%s2170_s27 + $0xe0] sm:$0xff] %v297_v28  }
  0x2e   : > { %302 = vst [vmem:[%s2170_s27 + $0xe8] sm:$0xff] %v301_v29  }
  0x2f   : > { %306 = vst [vmem:[%s2170_s27 + $0xf0] sm:$0xff] %v305_v30  }
  0x30   : > { %310 = vst [vmem:[%s2170_s27 + $0xf8] sm:$0xff] %v309_v31  }
  0x31   : > { %314 = vst [vmem:[%s2170_s27 + $0x100] sm:$0xff] %v313_v32  }
  0x32   : > { %318 = vst [vmem:[%s2170_s27 + $0x108] sm:$0xff] %v317_v33  }
  0x33   : > { %322 = vst [vmem:[%s2170_s27 + $0x110] sm:$0xff] %v321_v34  }
  0x34   : > { %326 = vst [vmem:[%s2170_s27 + $0x118] sm:$0xff] %v325_v35  }
  0x35 PF: > { %p1773_p6 = scmp.ge.s32.totalorder %s2100_s16, 1  ;;  %p495_p7 = scmp.lt.s32.totalorder %s2100_s16, 3 }
  0x37   : > { %p496_p8 = pnand %p1773_p6, %p495_p7 }
  0x38   : > { %s502_s30 = sand.u32 (!%p496_p8), 1, %s2084_s12   ;;  %p542_p9 = scmp.lt.s32.totalorder (!%p496_p8), %s2092_s14, 1 }
  0x39   : > { %499 = sbr.rel (%p496_p8) target bundleno = 351 (0x15f), region = 69 }
  0x3a   : > { %s2020_s4 = smul.u32 (!%p496_p8), 288, %s502_s30 }
  0x3c   : > { %s2264_s18 = scalar_lea.vmem (!%p496_p8), [#allocation2], %s2020_s4 }
  0x3e   : > { %v1784_v36 = vld [vmem:[%s2592_s1 + $0x4] sm:$0xf]  ;;  %vm604_vm0 = vcmask 1043456   ;;  %v1825_v38 = vld [vmem:[%s2592_s1 + $0x8] sm:$0xf]  ;;  %vm591_vm1 = vcmask 64512  }
  0x3f   : > { %v606_v37 = vsel %vm604_vm0, %v1784_v36, 0  ;;  %v1838_v39 = vld [vmem:[%s2592_s1 + $0xc] sm:$0xf]  ;;  %v859_v40 = vsel %vm604_vm0, %v1825_v38, 0  ;;  %v559_v42 = vld [vmem:[%s2592_s1] sm:$0xf] }
  0x40   : > { %2015 = vmatpush.bf16.msra.mxu1 %v606_v37  ;;  %2016 = vmatpush.bf16.msra.mxu2 %v606_v37  ;;  %v942_v41 = vsel %vm604_vm0, %v1838_v39, 0  ;;  %v1867_v43 = vld [vmem:[%s2592_s1 + $0x10] sm:$0xf]  ;;  %v670_v44 = vsel %vm604_vm0, %v559_v42, 0  ;;  %v1791_v46 = vld [vmem:[%s2264_s18 + $0x28] sm:$0xf] }
  0x41   : > { %2017 = vmatpush.bf16.msra.mxu3 %v606_v37  ;;  %615 = vmatpush.bf16.msra.mxu0 %v606_v37  ;;  %v1025_v45 = vsel %vm604_vm0, %v1867_v43, 0  ;;  %v1996_v47 = vld [vmem:[%s2264_s18 + $0x34] sm:$0xf0]  ;;  %v1795_v48 = vld [vmem:[%s2264_s18 + $0x48] sm:$0xf]  ;;  %s2604_s14 = smov (!%p542_p9, %s2092_s14), 1 }
  0x42   : > { %v1792_v49 = vor.u32 %v1996_v47, %v1791_v46  ;;  %v1997_v50 = vld [vmem:[%s2264_s18 + $0x54] sm:$0xf0]  ;;  %v1799_v51 = vld [vmem:[%s2264_s18 + $0x68] sm:$0xf]  ;;  %v701_v58 = vld [vmem:[%s2264_s18] sm:$0xf] }
  0x43   : > { %v1998_v52 = vld [vmem:[%s2264_s18 + $0x74] sm:$0xf0]  ;;  %v1796_v53 = vor.u32 %v1997_v50, %v1795_v48  ;;  %v1787_v55 = vld [vmem:[%s2264_s18 + $0x8] sm:$0xf]  ;;  %v702_v59 = vld [vmem:[%s2264_s18 + $0x4] sm:$0x1] }
  0x44   : > { %868 = vmatpush.bf16.msrb.mxu2 %v859_v40  ;;  %679 = vmatpush.bf16.msrb.mxu1 %v670_v44  ;;  %v1800_v54 = vor.u32 %v1998_v52, %v1799_v51  ;;  %v1995_v56 = vld [vmem:[%s2264_s18 + $0x14] sm:$0xf0]  ;;  %v703_v60 = vld [vmem:[%s2264_s18 + $0x10] sm:$0xf]  ;;  %v704_v61 = vld [vmem:[%s2264_s18 + $0x14] sm:$0x1] }
  0x45   : > { %951 = vmatpush.bf16.msrb.mxu3 %v942_v41  ;;  %1034 = vmatpush.bf16.msrb.mxu0 %v1025_v45  ;;  %v1788_v57 = vor.u32 %v1995_v56, %v1787_v55  ;;  %v721_v62 = vshrl.u32 %v701_v58, 16  ;;  %v724_v63 = vshll.u32 %v701_v58, 16  ;;  %v730_v0 = vshll.u32 %v702_v59, 16  ;;  %v1917_v4 = vld [vmem:[%s2592_s1 + $0x18] sm:$0xf]  ;;  %s1990_s30 = sshll.u32 %s2604_s14, 5 }
  0x46   : > { %1802 = vmatmul.msk.bf16.vlgmr.msra.gmra.mxu1 %vm591_vm1, %v1792_v49  ;;  %1803 = vmatmul.msk.bf16.vlgmr.msra.gmra.mxu2 %vm591_vm1, %v1796_v53  ;;  %v735_v1 = vshrl.u32 %v703_v60, 16  ;;  %vm717_vm2 = vsmask.f32 3328  ;;  %v738_v2 = vshll.u32 %v703_v60, 16  ;;  %v744_v3 = vshll.u32 %v704_v61, 16  ;;  %s2527_s6 = scalar_lea.vmem %s2594_s3, %s1990_s30 }
  0x47   : > { %1804 = vmatmul.msk.bf16.vlgmr.msra.gmra.mxu3 %vm591_vm1, %v1800_v54  ;;  %1801 = vmatmul.msk.bf16.vlgmr.msra.gmra.mxu0 %vm591_vm1, %v1788_v57  ;;  %vm718_vm3 = vsmask.f32 7440  ;;  %v723_v5 = vrot.slane %v721_v62, 4  ;;  %v726_v6 = vrot.slane %v724_v63, 5  ;;  %v732_v8 = vrot.slane %v730_v0, 5 }
  0x48   : > { %v737_v7 = vrot.slane %v735_v1, 4  ;;  %v740_v9 = vrot.slane %v738_v2, 5  ;;  %v746_v10 = vrot.slane %v744_v3, 5  ;;  %v1302_v11 = vsel %vm604_vm0, %v1917_v4, 0  ;;  %v1946_v13 = vld [vmem:[%s2592_s1 + $0x1c] sm:$0xf]  ;;  %vm2299_vm4 = vmor %vm717_vm2, %vm718_vm3 }
  0x49   : > { %v727_v12 = vor.u32 %v726_v6, %v723_v5  ;;  %1311 = vmatpush.bf16.msra.mxu2 %v1302_v11  ;;  %v1904_v14 = vld [vmem:[%s2592_s1 + $0x14] sm:$0xf]  ;;  %v1983_v15 = vld [vmem:[%s2592_s1 + $0x20] sm:$0xf]  ;;  %v1991_v17 = vld [vmem:[%s2264_s18 + $0xc] sm:$0xf0] }
  0x4a   : > { %v1807_v16 = vld [vmem:[%s2264_s18] sm:$0xf]  ;;  %v741_v19 = vor.u32 %v740_v9, %v737_v7  ;;  %v1385_v20 = vsel %vm604_vm0, %v1946_v13, 0  ;;  %v1219_v21 = vsel %vm604_vm0, %v1904_v14, 0  ;;  %v1579_v22 = vsel %vm604_vm0, %v1983_v15, 0 }
  0x4b   : > { %v728_v23 = vrot.slane %v727_v12, 4  ;;  %v1841_v24 = vld [vmem:[%s2264_s18 + $0x90] sm:$0xf]  ;;  %1394 = vmatpush.bf16.msra.mxu3 %v1385_v20  ;;  %1228 = vmatpush.bf16.msra.mxu1 %v1219_v21  ;;  %v705_v25 = vld [vmem:[%s2264_s18 + $0x20] sm:$0xf]  ;;  %v1808_v41 = vor.u32 %v1991_v17, %v1807_v16  ;;  %vm1646_vm5 = vcmask 60416  }
  0x4c   : > { %v742_v26 = vrot.slane %v741_v19, 4  ;;  %v1999_v27 = vld [vmem:[%s2264_s18 + $0x9c] sm:$0xf0]  ;;  %1588 = vmatpush.bf16.msra.mxu0 %v1579_v22  ;;  %v707_v28 = vld [vmem:[%s2264_s18 + $0x30] sm:$0xf]  ;;  %v749_v29 = vshrl.u32 %v705_v25, 16 }
  0x4d   : > { %v733_v30 = vsel %vm2299_vm4, %v728_v23, %v732_v8  ;;  %v1870_v31 = vld [vmem:[%s2264_s18 + $0x98] sm:$0xf]  ;;  %v2003_v32 = vld [vmem:[%s2264_s18 + $0xa4] sm:$0xf0]  ;;  %v752_v33 = vshll.u32 %v705_v25, 16  ;;  %v763_v34 = vshrl.u32 %v707_v28, 16  ;;  %v1842_v45 = vor.u32 %v1999_v27, %v1841_v24 }
  0x4e   : > { %v747_v35 = vsel %vm2299_vm4, %v742_v26, %v746_v10  ;;  %v834_v36 = vunpack.c.l.b16 %v733_v30  ;;  %v706_v37 = vld [vmem:[%s2264_s18 + $0x24] sm:$0x1]  ;;  %v708_v38 = vld [vmem:[%s2264_s18 + $0x34] sm:$0x1]  ;;  %v751_v39 = vrot.slane %v749_v29, 4  ;;  %v766_v40 = vshll.u32 %v707_v28, 16 }
  0x4f   : > { %v835_v42 = vunpack.c.l.b16 %v747_v35  ;;  %v754_v43 = vrot.slane %v752_v33, 5  ;;  %v765_v44 = vrot.slane %v763_v34, 4  ;;  %v1871_v46 = vor.u32 %v2003_v32, %v1870_v31  ;;  %v709_v57 = vld [vmem:[%s2264_s18 + $0x40] sm:$0xf]  ;;  %v711_v58 = vld [vmem:[%s2264_s18 + $0x50] sm:$0xf] }
  0x50   : > { %v768_v47 = vrot.slane %v766_v40, 5  ;;  %v758_v50 = vshll.u32 %v706_v37, 16  ;;  %v772_v51 = vshll.u32 %v708_v38, 16  ;;  %v777_v59 = vshrl.u32 %v709_v57, 16  ;;  %v1811_v1 = vld [vmem:[%s2264_s18 + $0x20] sm:$0xf] }
  0x51   : > { %v842_v48 = vpack.c.b16 %v835_v42, %v834_v36  ;;  %v755_v49 = vor.u32 %v754_v43, %v751_v39  ;;  %v780_v60 = vshll.u32 %v709_v57, 16  ;;  %v791_v63 = vshrl.u32 %v711_v58, 16  ;;  %v1992_v2 = vld [vmem:[%s2264_s18 + $0x2c] sm:$0xf0]  ;;  %v2000_v6 = vld [vmem:[%s2264_s18 + $0xbc] sm:$0xf0] }
  0x52   : > { %v769_v52 = vor.u32 %v768_v47, %v765_v44  ;;  %v760_v54 = vrot.slane %v758_v50, 5  ;;  %v774_v56 = vrot.slane %v772_v51, 5  ;;  %v794_v0 = vshll.u32 %v711_v58, 16  ;;  %v1845_v5 = vld [vmem:[%s2264_s18 + $0xb0] sm:$0xf] }
  0x53   : > { %v756_v53 = vrot.slane %v755_v49, 4  ;;  %v1874_v7 = vld [vmem:[%s2264_s18 + $0xb8] sm:$0xf]  ;;  %v2004_v8 = vld [vmem:[%s2264_s18 + $0xc4] sm:$0xf0]  ;;  %v779_v9 = vrot.slane %v777_v59, 4  ;;  %v1812_v15 = vor.u32 %v1992_v2, %v1811_v1  ;;  %v1846_v17 = vor.u32 %v2000_v6, %v1845_v5 }
  0x54   : > { %v770_v55 = vrot.slane %v769_v52, 4  ;;  %v782_v10 = vrot.slane %v780_v60, 5  ;;  %v793_v11 = vrot.slane %v791_v63, 4  ;;  %v796_v12 = vrot.slane %v794_v0, 5  ;;  %v710_v13 = vld [vmem:[%s2264_s18 + $0x44] sm:$0x1] }
  0x55   : > { %v761_v61 = vsel %vm2299_vm4, %v756_v53, %v760_v54  ;;  %v712_v14 = vld [vmem:[%s2264_s18 + $0x54] sm:$0x1]  ;;  %v1875_v19 = vor.u32 %v2004_v8, %v1874_v7  ;;  %v786_v21 = vshll.u32 %v710_v13, 16  ;;  %v713_v24 = vld [vmem:[%s2264_s18 + $0x60] sm:$0xf] }
  0x56   : > { %1821 = vmatmul.msk.bf16.vlgmr.msrb.gmra.mxu1 %vm591_vm1, %v1808_v41  ;;  %1826 = vmatmul.msk.bf16.vlgmr.msrb.gmra.mxu2 %vm591_vm1, %v842_v48  ;;  %v775_v62 = vsel %vm2299_vm4, %v770_v55, %v774_v56  ;;  %v836_v3 = vunpack.c.l.b16 %v761_v61  ;;  %v783_v20 = vor.u32 %v782_v10, %v779_v9  ;;  %v797_v22 = vor.u32 %v796_v12, %v793_v11  ;;  %v715_v25 = vld [vmem:[%s2264_s18 + $0x70] sm:$0xf]  ;;  %v714_v40 = vld [vmem:[%s2264_s18 + $0x64] sm:$0x1]  ;;  %v716_v41 = vld [vmem:[%s2264_s18 + $0x74] sm:$0x1] }
  0x57   : > { %1855 = vmatmul.msk.bf16.vlgmr.msrb.gmra.mxu3 %vm591_vm1, %v1842_v45  ;;  %1884 = vmatmul.msk.bf16.vlgmr.msrb.gmra.mxu0 %vm591_vm1, %v1871_v46  ;;  %v837_v4 = vunpack.c.l.b16 %v775_v62  ;;  %v800_v23 = vshll.u32 %v712_v14, 16  ;;  %v788_v27 = vrot.slane %v786_v21, 5  ;;  %v805_v30 = vshrl.u32 %v713_v24, 16  ;;  %v1815_v42 = vld [vmem:[%s2264_s18 + $0x40] sm:$0xf] }
  0x58   : > { %v784_v26 = vrot.slane %v783_v20, 4  ;;  %v798_v28 = vrot.slane %v797_v22, 4  ;;  %v808_v31 = vshll.u32 %v713_v24, 16  ;;  %v819_v32 = vshrl.u32 %v715_v25, 16  ;;  %v1993_v43 = vld [vmem:[%s2264_s18 + $0x4c] sm:$0xf0] }
  0x59   : > { %v843_v16 = vpack.c.b16 %v837_v4, %v836_v3  ;;  %v802_v29 = vrot.slane %v800_v23, 5  ;;  %v822_v33 = vshll.u32 %v715_v25, 16  ;;  %v807_v36 = vrot.slane %v805_v30, 4  ;;  %v1849_v46 = vld [vmem:[%s2264_s18 + $0xd0] sm:$0xf] }
  0x5a   : > { %v789_v34 = vsel %vm2299_vm4, %v784_v26, %v788_v27  ;;  %v810_v37 = vrot.slane %v808_v31, 5  ;;  %v821_v38 = vrot.slane %v819_v32, 4  ;;  %v2001_v47 = vld [vmem:[%s2264_s18 + $0xdc] sm:$0xf0]  ;;  %v1878_v48 = vld [vmem:[%s2264_s18 + $0xd8] sm:$0xf]  ;;  %v1816_v54 = vor.u32 %v1993_v43, %v1815_v42 }
  0x5b   : > { %v803_v35 = vsel %vm2299_vm4, %v798_v28, %v802_v29  ;;  %v824_v39 = vrot.slane %v822_v33, 5  ;;  %v838_v44 = vunpack.c.l.b16 %v789_v34  ;;  %v2005_v49 = vld [vmem:[%s2264_s18 + $0xe4] sm:$0xf0]  ;;  %v814_v51 = vshll.u32 %v714_v40, 16  ;;  %v1888_v62 = vld [vmem:[%s2264_s18 + $0x90] sm:$0xf] }
  0x5c   : > { %v839_v45 = vunpack.c.l.b16 %v803_v35  ;;  %v811_v50 = vor.u32 %v810_v37, %v807_v36  ;;  %v828_v53 = vshll.u32 %v716_v41, 16  ;;  %v1850_v56 = vor.u32 %v2001_v47, %v1849_v46  ;;  %v1890_v63 = vld [vmem:[%s2264_s18 + $0xa0] sm:$0xf]  ;;  %v1967_v0 = vld [vmem:[%s2264_s18 + $0x10] sm:$0xf] }
  0x5d   : > { %v825_v52 = vor.u32 %v824_v39, %v821_v38  ;;  %v1879_v57 = vor.u32 %v2005_v49, %v1878_v48  ;;  %v816_v59 = vrot.slane %v814_v51, 5  ;;  %v1969_v1 = vld [vmem:[%s2264_s18 + $0x20] sm:$0xf]  ;;  %v1081_v4 = vshrl.u32 %v1888_v62, 16  ;;  %v1994_v13 = vld [vmem:[%s2264_s18 + $0x6c] sm:$0xf0] }
  0x5e   : > { %v844_v55 = vpack.c.b16 %v839_v45, %v838_v44  ;;  %v812_v58 = vrot.slane %v811_v50, 4  ;;  %v830_v61 = vrot.slane %v828_v53, 5  ;;  %v1084_v5 = vshll.u32 %v1888_v62, 16  ;;  %v1819_v12 = vld [vmem:[%s2264_s18 + $0x60] sm:$0xf] }
  0x5f   : > { %v826_v60 = vrot.slane %v825_v52, 4  ;;  %v1095_v6 = vshrl.u32 %v1890_v63, 16  ;;  %v1098_v7 = vshll.u32 %v1890_v63, 16  ;;  %v1441_v8 = vshrl.u32 %v1967_v0, 16  ;;  %v1891_v24 = vld [vmem:[%s2264_s18 + $0xa4] sm:$0x1] }
  0x60   : > { %v817_v2 = vsel %vm2299_vm4, %v812_v58, %v816_v59  ;;  %v1444_v9 = vshll.u32 %v1967_v0, 16  ;;  %v1455_v10 = vshrl.u32 %v1969_v1, 16  ;;  %v1458_v11 = vshll.u32 %v1969_v1, 16  ;;  %v1968_v29 = vld [vmem:[%s2264_s18 + $0x14] sm:$0x1] }
  0x61   : > { %v831_v3 = vsel %vm2299_vm4, %v826_v60, %v830_v61  ;;  %v840_v14 = vunpack.c.l.b16 %v817_v2  ;;  %v1083_v20 = vrot.slane %v1081_v4, 4  ;;  %v1086_v21 = vrot.slane %v1084_v5, 5  ;;  %v1970_v30 = vld [vmem:[%s2264_s18 + $0x24] sm:$0x1]  ;;  %v1882_v34 = vld [vmem:[%s2264_s18 + $0xf8] sm:$0xf] }
  0x62   : > { %v1097_v22 = vrot.slane %v1095_v6, 4  ;;  %v1100_v23 = vrot.slane %v1098_v7, 5  ;;  %v1443_v25 = vrot.slane %v1441_v8, 4  ;;  %v1446_v26 = vrot.slane %v1444_v9, 5  ;;  %v2006_v35 = vld [vmem:[%s2264_s18 + $0x104] sm:$0xf0] }
  0x63   : > { %v1457_v27 = vrot.slane %v1455_v10, 4  ;;  %v1460_v28 = vrot.slane %v1458_v11, 5  ;;  %v1820_v31 = vor.u32 %v1994_v13, %v1819_v12  ;;  %v1087_v36 = vor.u32 %v1086_v21, %v1083_v20  ;;  %v1892_v45 = vld [vmem:[%s2264_s18 + $0xb0] sm:$0xf]  ;;  %v1894_v46 = vld [vmem:[%s2264_s18 + $0xc0] sm:$0xf] }
  0x64   : > { %v1101_v38 = vor.u32 %v1100_v23, %v1097_v22  ;;  %v1104_v39 = vshll.u32 %v1891_v24, 16  ;;  %v1447_v40 = vor.u32 %v1446_v26, %v1443_v25  ;;  %v1450_v41 = vshll.u32 %v1968_v29, 16  ;;  %v1971_v59 = vld [vmem:[%s2264_s18 + $0x30] sm:$0xf]  ;;  %v1973_v60 = vld [vmem:[%s2264_s18 + $0x40] sm:$0xf] }
  0x65   : > { %v1461_v42 = vor.u32 %v1460_v28, %v1457_v27  ;;  %v1464_v43 = vshll.u32 %v1970_v30, 16  ;;  %v1883_v44 = vor.u32 %v2006_v35, %v1882_v34  ;;  %v1088_v47 = vrot.slane %v1087_v36, 4  ;;  %v1893_v1 = vld [vmem:[%s2264_s18 + $0xb4] sm:$0x1]  ;;  %v1895_v6 = vld [vmem:[%s2264_s18 + $0xc4] sm:$0x1] }
  0x66   : > { %1822 = vmatmul.msk.bf16.gmra.mxu1 %vm591_vm1, %v1812_v15  ;;  %1827 = vmatmul.msk.bf16.gmra.mxu2 %vm591_vm1, %v843_v16  ;;  %v841_v15 = vunpack.c.l.b16 %v831_v3  ;;  %v1853_v16 = vld [vmem:[%s2264_s18 + $0xf0] sm:$0xf]  ;;  %v1102_v49 = vrot.slane %v1101_v38, 4  ;;  %v1106_v50 = vrot.slane %v1104_v39, 5  ;;  %v1448_v51 = vrot.slane %v1447_v40, 4 }
  0x67   : > { %1856 = vmatmul.msk.bf16.gmra.mxu3 %vm591_vm1, %v1846_v17  ;;  %1885 = vmatmul.msk.bf16.gmra.mxu0 %vm591_vm1, %v1875_v19  ;;  %v2002_v17 = vld [vmem:[%s2264_s18 + $0xfc] sm:$0xf0]  ;;  %v1889_v19 = vld [vmem:[%s2264_s18 + $0x94] sm:$0x1]  ;;  %v1452_v52 = vrot.slane %v1450_v41, 5  ;;  %v1462_v53 = vrot.slane %v1461_v42, 4 }
  0x68   : > { %v845_v32 = vpack.c.b16 %v841_v15, %v840_v14  ;;  %v1854_v33 = vor.u32 %v2002_v17, %v1853_v16  ;;  %v1090_v37 = vshll.u32 %v1889_v19, 16  ;;  %v1126_v58 = vshll.u32 %v1894_v46, 16  ;;  %v1920_v13 = vld [vmem:[%s2264_s18 + $0x10] sm:$0xf]  ;;  %v2007_v14 = vld [vmem:[%s2264_s18 + $0x1c] sm:$0xf0] }
  0x69   : > { %v1107_v62 = vsel %vm2299_vm4, %v1102_v49, %v1106_v50  ;;  %v1453_v63 = vsel %vm2299_vm4, %v1448_v51, %v1452_v52  ;;  %v1469_v7 = vshrl.u32 %v1971_v59, 16  ;;  %v1472_v8 = vshll.u32 %v1971_v59, 16  ;;  %v1949_v17 = vld [vmem:[%s2264_s18 + $0x18] sm:$0xf]  ;;  %v2011_v19 = vld [vmem:[%s2264_s18 + $0x24] sm:$0xf0] }
  0x6a   : > { %v1092_v48 = vrot.slane %v1090_v37, 5  ;;  %v1128_v5 = vrot.slane %v1126_v58, 5  ;;  %v1483_v9 = vshrl.u32 %v1973_v60, 16  ;;  %v1486_v10 = vshll.u32 %v1973_v60, 16  ;;  %v1972_v29 = vld [vmem:[%s2264_s18 + $0x34] sm:$0x1] }
  0x6b   : > { %v1195_v12 = vunpack.c.l.b16 %v1107_v62  ;;  %v1554_v15 = vunpack.c.l.b16 %v1453_v63  ;;  %v1118_v21 = vshll.u32 %v1893_v1, 16  ;;  %v1132_v23 = vshll.u32 %v1895_v6, 16  ;;  %v1974_v30 = vld [vmem:[%s2264_s18 + $0x44] sm:$0x1]  ;;  %v1896_v42 = vld [vmem:[%s2264_s18 + $0xd0] sm:$0xf] }
  0x6c   : > { %v1093_v61 = vsel %vm2299_vm4, %v1088_v47, %v1092_v48  ;;  %v1471_v24 = vrot.slane %v1469_v7, 4  ;;  %v1474_v25 = vrot.slane %v1472_v8, 5  ;;  %v1485_v26 = vrot.slane %v1483_v9, 4  ;;  %v1977_v51 = vld [vmem:[%s2264_s18 + $0x60] sm:$0xf] }
  0x6d   : > { %v1194_v11 = vunpack.c.l.b16 %v1093_v61  ;;  %v1488_v27 = vrot.slane %v1486_v10, 5  ;;  %v1120_v35 = vrot.slane %v1118_v21, 5  ;;  %v1134_v37 = vrot.slane %v1132_v23, 5  ;;  %v2008_v1 = vld [vmem:[%s2264_s18 + $0x3c] sm:$0xf0] }
  0x6e   : > { %v1475_v38 = vor.u32 %v1474_v25, %v1471_v24  ;;  %v1478_v39 = vshll.u32 %v1972_v29, 16  ;;  %v1492_v41 = vshll.u32 %v1974_v30, 16  ;;  %v1137_v52 = vshrl.u32 %v1896_v42, 16  ;;  %v1897_v7 = vld [vmem:[%s2264_s18 + $0xd4] sm:$0x1] }
  0x6f   : > { %v1202_v28 = vpack.c.b16 %v1195_v12, %v1194_v11  ;;  %v1489_v40 = vor.u32 %v1488_v27, %v1485_v26  ;;  %v1511_v58 = vshrl.u32 %v1977_v51, 16  ;;  %v1514_v59 = vshll.u32 %v1977_v51, 16  ;;  %v1899_v8 = vld [vmem:[%s2264_s18 + $0xe4] sm:$0x1]  ;;  %v2012_v11 = vld [vmem:[%s2264_s18 + $0x44] sm:$0xf0] }
  0x70   : > { %v1476_v47 = vrot.slane %v1475_v38, 4  ;;  %v1480_v48 = vrot.slane %v1478_v39, 5  ;;  %v1494_v50 = vrot.slane %v1492_v41, 5  ;;  %v1146_v21 = vshll.u32 %v1897_v7, 16  ;;  %v1900_v39 = vld [vmem:[%s2264_s18 + $0xf0] sm:$0xf] }
  0x71   : > { %v1490_v49 = vrot.slane %v1489_v40, 4  ;;  %v1160_v23 = vshll.u32 %v1899_v8, 16  ;;  %v1902_v40 = vld [vmem:[%s2264_s18 + $0x100] sm:$0xf] }
  0x72   : > { %v1481_v62 = vsel %vm2299_vm4, %v1476_v47, %v1480_v48  ;;  %v1179_v47 = vshrl.u32 %v1902_v40, 16  ;;  %v1182_v48 = vshll.u32 %v1902_v40, 16  ;;  %v1961_v40 = vld [vmem:[%s2264_s18 + $0x78] sm:$0xf] }
  0x73   : > { %v1495_v63 = vsel %vm2299_vm4, %v1490_v49, %v1494_v50  ;;  %v1556_v12 = vunpack.c.l.b16 %v1481_v62 }
  0x76   : > { %1823 = vmatmul.msk.bf16.gmra.mxu1 %vm591_vm1, %v1816_v54  ;;  %1828 = vmatmul.msk.bf16.gmra.mxu2 %vm591_vm1, %v844_v55  ;;  %v1466_v54 = vrot.slane %v1464_v43, 5  ;;  %v1109_v55 = vshrl.u32 %v1892_v45, 16  ;;  %v1898_v43 = vld [vmem:[%s2264_s18 + $0xe0] sm:$0xf] }
  0x77   : > { %1857 = vmatmul.msk.bf16.gmra.mxu3 %vm591_vm1, %v1850_v56  ;;  %1886 = vmatmul.msk.bf16.gmra.mxu0 %vm591_vm1, %v1879_v57  ;;  %v1112_v56 = vshll.u32 %v1892_v45, 16  ;;  %v1123_v57 = vshrl.u32 %v1894_v46, 16  ;;  %v1975_v46 = vld [vmem:[%s2264_s18 + $0x50] sm:$0xf] }
  0x78   : > { %v1467_v0 = vsel %vm2299_vm4, %v1462_v53, %v1466_v54  ;;  %v1111_v2 = vrot.slane %v1109_v55, 4  ;;  %v1140_v53 = vshll.u32 %v1896_v42, 16  ;;  %v1151_v54 = vshrl.u32 %v1898_v43, 16 }
  0x79   : > { %v1114_v3 = vrot.slane %v1112_v56, 5  ;;  %v1125_v4 = vrot.slane %v1123_v57, 4  ;;  %v1555_v16 = vunpack.c.l.b16 %v1467_v0  ;;  %v1154_v55 = vshll.u32 %v1898_v43, 16  ;;  %v1924_v0 = vld [vmem:[%s2264_s18 + $0x30] sm:$0xf] }
  0x7a   : > { %v1497_v56 = vshrl.u32 %v1975_v46, 16  ;;  %v1500_v57 = vshll.u32 %v1975_v46, 16  ;;  %v1925_v24 = vor.u32 %v2008_v1, %v1924_v0  ;;  %v1979_v43 = vld [vmem:[%s2264_s18 + $0x70] sm:$0xf]  ;;  %v1168_v46 = vshll.u32 %v1900_v39, 16 }
  0x7b   : > { %v1115_v20 = vor.u32 %v1114_v3, %v1111_v2  ;;  %v1129_v22 = vor.u32 %v1128_v5, %v1125_v4  ;;  %v1953_v2 = vld [vmem:[%s2264_s18 + $0x38] sm:$0xf]  ;;  %v1139_v3 = vrot.slane %v1137_v52, 4  ;;  %v1142_v4 = vrot.slane %v1140_v53, 5 }
  0x7c   : > { %v1153_v5 = vrot.slane %v1151_v54, 4  ;;  %v1156_v6 = vrot.slane %v1154_v55, 5  ;;  %v1499_v9 = vrot.slane %v1497_v56, 4  ;;  %v1502_v10 = vrot.slane %v1500_v57, 5  ;;  %v1928_v57 = vld [vmem:[%s2264_s18 + $0x50] sm:$0xf] }
  0x7d   : > { %v1116_v34 = vrot.slane %v1115_v20, 4  ;;  %v1130_v36 = vrot.slane %v1129_v22, 4  ;;  %v1143_v20 = vor.u32 %v1142_v4, %v1139_v3  ;;  %v1954_v25 = vor.u32 %v2012_v11, %v1953_v2  ;;  %v1901_v3 = vld [vmem:[%s2264_s18 + $0xf4] sm:$0x1]  ;;  %v1903_v4 = vld [vmem:[%s2264_s18 + $0x104] sm:$0x1] }
  0x7e   : > { %v1157_v22 = vor.u32 %v1156_v6, %v1153_v5  ;;  %v1503_v26 = vor.u32 %v1502_v10, %v1499_v9  ;;  %v1525_v51 = vshrl.u32 %v1979_v43, 16  ;;  %v1528_v52 = vshll.u32 %v1979_v43, 16 }
  0x7f   : > { %v1135_v45 = vsel %vm2299_vm4, %v1130_v36, %v1134_v37  ;;  %v1170_v62 = vrot.slane %v1168_v46, 5  ;;  %v1184_v0 = vrot.slane %v1182_v48, 5 }
  0x80   : > { %v1197_v61 = vunpack.c.l.b16 %v1135_v45  ;;  %v1165_v45 = vshrl.u32 %v1900_v39, 16  ;;  %v1527_v5 = vrot.slane %v1525_v51, 4  ;;  %v1530_v6 = vrot.slane %v1528_v52, 5  ;;  %v2010_v39 = vld [vmem:[%s2264_s18 + $0x7c] sm:$0xf0] }
  0x86   : > { %1824 = vmatmul.msk.bf16.gmra.mxu1 %vm591_vm1, %v1820_v31  ;;  %1829 = vmatmul.msk.bf16.gmra.mxu2 %vm591_vm1, %v845_v32  ;;  %v1921_v31 = vor.u32 %v2007_v14, %v1920_v13  ;;  %v1950_v32 = vor.u32 %v2011_v19, %v1949_v17  ;;  %v1557_v13 = vunpack.c.l.b16 %v1495_v63  ;;  %v1976_v14 = vld [vmem:[%s2264_s18 + $0x54] sm:$0x1]  ;;  %v1978_v19 = vld [vmem:[%s2264_s18 + $0x64] sm:$0x1]  ;;  %v1181_v63 = vrot.slane %v1179_v47, 4 }
  0x87   : > { %1858 = vmatmul.msk.bf16.gmra.mxu3 %vm591_vm1, %v1854_v33  ;;  %1887 = vmatmul.msk.bf16.gmra.mxu0 %vm591_vm1, %v1883_v44  ;;  %v1562_v33 = vpack.c.b16 %v1555_v16, %v1554_v15  ;;  %v1121_v44 = vsel %vm2299_vm4, %v1116_v34, %v1120_v35  ;;  %v1513_v15 = vrot.slane %v1511_v58, 4  ;;  %v1516_v16 = vrot.slane %v1514_v59, 5  ;;  %v2009_v58 = vld [vmem:[%s2264_s18 + $0x5c] sm:$0xf0]  ;;  %v1957_v59 = vld [vmem:[%s2264_s18 + $0x58] sm:$0xf] }
  0x88   : > { %v1196_v60 = vunpack.c.l.b16 %v1121_v44  ;;  %v1506_v27 = vshll.u32 %v1976_v14, 16  ;;  %v1520_v30 = vshll.u32 %v1978_v19, 16  ;;  %v1162_v34 = vrot.slane %v1160_v23, 5  ;;  %v1981_v44 = vld [vmem:[%s2264_s18 + $0x80] sm:$0xf] }
  0x89   : > { %v1517_v29 = vor.u32 %v1516_v16, %v1513_v15  ;;  %v1504_v35 = vrot.slane %v1503_v26, 4  ;;  %v1539_v53 = vshrl.u32 %v1981_v44, 16  ;;  %v1542_v54 = vshll.u32 %v1981_v44, 16 }
  0x8a   : > { %v1203_v17 = vpack.c.b16 %v1197_v61, %v1196_v60  ;;  %v1508_v36 = vrot.slane %v1506_v27, 5  ;;  %v1522_v38 = vrot.slane %v1520_v30, 5  ;;  %v2013_v60 = vld [vmem:[%s2264_s18 + $0x64] sm:$0xf0]  ;;  %v1167_v61 = vrot.slane %v1165_v45, 4 }
  0x8b   : > { %v1518_v37 = vrot.slane %v1517_v29, 4  ;;  %v1541_v7 = vrot.slane %v1539_v53, 4  ;;  %v1544_v8 = vrot.slane %v1542_v54, 5  ;;  %v1929_v10 = vor.u32 %v2009_v58, %v1928_v57 }
  0x8c   : > { %v1509_v49 = vsel %vm2299_vm4, %v1504_v35, %v1508_v36  ;;  %v1958_v11 = vor.u32 %v2013_v60, %v1957_v59  ;;  %v1171_v14 = vor.u32 %v1170_v62, %v1167_v61  ;;  %v1174_v15 = vshll.u32 %v1901_v3, 16 }
  0x8d   : > { %v1523_v50 = vsel %vm2299_vm4, %v1518_v37, %v1522_v38  ;;  %v1558_v1 = vunpack.c.l.b16 %v1509_v49  ;;  %v1185_v16 = vor.u32 %v1184_v0, %v1181_v63  ;;  %v1932_v38 = vld [vmem:[%s2264_s18 + $0x70] sm:$0xf] }
  0x8e   : > { %v1559_v2 = vunpack.c.l.b16 %v1523_v50  ;;  %v1933_v46 = vor.u32 %v2010_v39, %v1932_v38 }
  0x8f   : > { %v1186_v26 = vrot.slane %v1185_v16, 4 }
  0x90   : > { %v1564_v19 = vpack.c.b16 %v1559_v2, %v1558_v1 }
  0x96   : > { %1905 = vmatmul.msk.bf16.vlgmr.msra.gmra.mxu1 %vm591_vm1, %v1202_v28  ;;  %1934 = vmatmul.msk.bf16.vlgmr.msra.gmra.mxu2 %vm591_vm1, %v1921_v31  ;;  %v1563_v28 = vpack.c.b16 %v1557_v13, %v1556_v12  ;;  %v1144_v31 = vrot.slane %v1143_v20, 4  ;;  %v1980_v12 = vld [vmem:[%s2264_s18 + $0x74] sm:$0x1]  ;;  %v1982_v13 = vld [vmem:[%s2264_s18 + $0x84] sm:$0x1]  ;;  %v1531_v20 = vor.u32 %v1530_v6, %v1527_v5 }
  0x97   : > { %1963 = vmatmul.msk.bf16.vlgmr.msra.gmra.mxu3 %vm591_vm1, %v1950_v32  ;;  %1984 = vmatmul.msk.bf16.vlgmr.msra.gmra.mxu0 %vm591_vm1, %v1562_v33  ;;  %v1148_v32 = vrot.slane %v1146_v21, 5  ;;  %v1158_v33 = vrot.slane %v1157_v22, 4  ;;  %v1534_v21 = vshll.u32 %v1980_v12, 16  ;;  %v1545_v22 = vor.u32 %v1544_v8, %v1541_v7 }
  0x98   : > { %v1548_v23 = vshll.u32 %v1982_v13, 16 }
  0x99   : > { %v1149_v41 = vsel %vm2299_vm4, %v1144_v31, %v1148_v32  ;;  %v1163_v42 = vsel %vm2299_vm4, %v1158_v33, %v1162_v34  ;;  %v1536_v29 = vrot.slane %v1534_v21, 5  ;;  %v1546_v30 = vrot.slane %v1545_v22, 4 }
  0x9a   : > { %v1198_v55 = vunpack.c.l.b16 %v1149_v41  ;;  %v1199_v56 = vunpack.c.l.b16 %v1163_v42  ;;  %v1550_v31 = vrot.slane %v1548_v23, 5  ;;  %v2014_v41 = vld [vmem:[%s2264_s18 + $0x84] sm:$0xf0] }
  0x9b   : > { %v1962_v47 = vor.u32 %v2014_v41, %v1961_v40  ;;  %v2521_v40 = vld [vmem:[%s2593_s2] ss:$0 sm:$0xff] }
  0x9c   : > { %v1204_v9 = vpack.c.b16 %v1199_v56, %v1198_v55  ;;  %v1551_v35 = vsel %vm2299_vm4, %v1546_v30, %v1550_v31 }
  0x9d   : > { %v1561_v43 = vunpack.c.l.b16 %v1551_v35 }
  0xa6   : > { %1906 = vmatmul.msk.bf16.gmra.mxu1 %vm591_vm1, %v1203_v17  ;;  %1935 = vmatmul.msk.bf16.gmra.mxu2 %vm591_vm1, %v1925_v24  ;;  %v1188_v17 = vshll.u32 %v1903_v4, 16  ;;  %v1172_v24 = vrot.slane %v1171_v14, 4 }
  0xa7   : > { %1964 = vmatmul.msk.bf16.gmra.mxu3 %vm591_vm1, %v1954_v25  ;;  %1985 = vmatmul.msk.bf16.gmra.mxu0 %vm591_vm1, %v1563_v28  ;;  %v1176_v25 = vrot.slane %v1174_v15, 5  ;;  %v1532_v28 = vrot.slane %v1531_v20, 4 }
  0xa8   : > { %v1190_v27 = vrot.slane %v1188_v17, 5 }
  0xa9   : > { %v1177_v32 = vsel %vm2299_vm4, %v1172_v24, %v1176_v25  ;;  %v1537_v34 = vsel %vm2299_vm4, %v1532_v28, %v1536_v29 }
  0xaa   : > { %v1191_v33 = vsel %vm2299_vm4, %v1186_v26, %v1190_v27  ;;  %v1200_v36 = vunpack.c.l.b16 %v1177_v32  ;;  %v1560_v42 = vunpack.c.l.b16 %v1537_v34 }
  0xab   : > { %v1201_v37 = vunpack.c.l.b16 %v1191_v33 }
  0xac   : > { %v1565_v48 = vpack.c.b16 %v1561_v43, %v1560_v42 }
  0xad   : > { %v1205_v44 = vpack.c.b16 %v1201_v37, %v1200_v36 }
  0xb6   : > { %1907 = vmatmul.msk.bf16.gmra.mxu1 %vm591_vm1, %v1204_v9  ;;  %1936 = vmatmul.msk.bf16.gmra.mxu2 %vm591_vm1, %v1929_v10 }
  0xb7   : > { %1965 = vmatmul.msk.bf16.gmra.mxu3 %vm591_vm1, %v1958_v11  ;;  %1986 = vmatmul.msk.bf16.gmra.mxu0 %vm591_vm1, %v1564_v19 }
  0xc3   : > { %v622_v45 = vpop.f32.mrf.mxu1 }
  0xc4   : > { %v617_v49 = vpop.f32.mrf.mxu0 }
  0xc6   : > { %1908 = vmatmul.msk.bf16.gmra.mxu1 %vm591_vm1, %v1205_v44  ;;  %1937 = vmatmul.msk.bf16.gmra.mxu2 %vm591_vm1, %v1933_v46 }
  0xc7   : > { %1966 = vmatmul.msk.bf16.gmra.mxu3 %vm591_vm1, %v1962_v47  ;;  %1987 = vmatmul.msk.bf16.gmra.mxu0 %vm591_vm1, %v1565_v48 }
  0xc9   : > { %v2468_v18 = vpop.f32.mrf.mxu2 }
  0xca   : > { %v2470_v50 = vpop.f32.mrf.mxu3 }
  0xcb   : > { %v2472_v51 = vpop.f32.mrf.mxu1 }
  0xcc   : > { %v619_v52 = vpop.f32.mrf.mxu0 }
  0xd1   : > { %v2474_v53 = vpop.f32.mrf.mxu2 }
  0xd2   : > { %v2476_v54 = vpop.f32.mrf.mxu3 }
  0xd3   : > { %v681_v55 = vpop.f32.mrf.mxu1 }
  0xd4   : > { %v1036_v56 = vpop.f32.mrf.mxu0  ;;  %v682_v21 = vadd.f32 %v681_v55, %v617_v49 }
  0xd9   : > { %v870_v57 = vpop.f32.mrf.mxu2 }
  0xda   : > { %v953_v58 = vpop.f32.mrf.mxu3  ;;  %v890_v23 = vadd.f32 %v870_v57, %v682_v21 }
  0xdb   : > { %v683_v59 = vpop.f32.mrf.mxu1 }
  0xdc   : > { %v1038_v60 = vpop.f32.mrf.mxu0  ;;  %v973_v26 = vadd.f32 %v953_v58, %v890_v23  ;;  %v684_v28 = vadd.f32 %v683_v59, %v619_v52 }
  0xde   : > { %v1056_v31 = vadd.f32 %v1036_v56, %v973_v26 }
  0xe1   : > { %v872_v61 = vpop.f32.mrf.mxu2 }
  0xe2   : > { %v955_v62 = vpop.f32.mrf.mxu3  ;;  %v891_v30 = vadd.f32 %v872_v61, %v684_v28 }
  0xe3   : > { %v686_v63 = vpop.f32.mrf.mxu1 }
  0xe4   : > { %v2478_v0 = vpop.f32.mrf.mxu0  ;;  %v974_v35 = vadd.f32 %v955_v62, %v891_v30  ;;  %v687_v38 = vadd.f32 %v686_v63, %v622_v45 }
  0xe6   : > { %v1057_v44 = vadd.f32 %v1038_v60, %v974_v35 }
  0xe9   : > { %v875_v1 = vpop.f32.mrf.mxu2 }
  0xea   : > { %v958_v2 = vpop.f32.mrf.mxu3  ;;  %v892_v42 = vadd.f32 %v875_v1, %v687_v38 }
  0xeb   : > { %v688_v3 = vpop.f32.mrf.mxu1 }
  0xec   : > { %v2480_v4 = vpop.f32.mrf.mxu0  ;;  %v975_v52 = vadd.f32 %v958_v2, %v892_v42  ;;  %v689_v57 = vadd.f32 %v688_v3, %v2472_v51 }
  0xee   : > { %v1058_v63 = vadd.f32 %v2478_v0, %v975_v52 }
  0xf1   : > { %v877_v5 = vpop.f32.mrf.mxu2 }
  0xf2   : > { %v2482_v6 = vpop.f32.mrf.mxu3  ;;  %v893_v61 = vadd.f32 %v877_v5, %v689_v57 }
  0xf3   : > { %v2484_v7 = vpop.f32.mrf.mxu1 }
  0xf4   : > { %v2486_v8 = vpop.f32.mrf.mxu0  ;;  %v976_v26 = vadd.f32 %v2482_v6, %v893_v61  ;;  %v692_v3 = vadd.f32 %v2484_v7, %v2468_v18 }
  0xf9   : > { %v2488_v9 = vpop.f32.mrf.mxu2 }
  0xfa   : > { %v2490_v10 = vpop.f32.mrf.mxu3 }
  0xfb   : > { %v2492_v11 = vpop.f32.mrf.mxu1 }
  0xfc   : > { %v2494_v12 = vpop.f32.mrf.mxu0  ;;  %v694_v38 = vadd.f32 %v2492_v11, %v2474_v53 }
 0x101   : > { %v2496_v13 = vpop.f32.mrf.mxu2 }
 0x102   : > { %v2498_v14 = vpop.f32.mrf.mxu3 }
 0x103   : > { %v2500_v15 = vpop.f32.mrf.mxu1 }
 0x104   : > { %v2502_v16 = vpop.f32.mrf.mxu0 }
 0x109   : > { %v2504_v17 = vpop.f32.mrf.mxu2 }
 0x10a   : > { %v2506_v19 = vpop.f32.mrf.mxu3 }
 0x10b   : > { %v2508_v20 = vpop.f32.mrf.mxu1 }
 0x10c   : > { %v2510_v22 = vpop.f32.mrf.mxu0 }
 0x111   : > { %v2512_v24 = vpop.f32.mrf.mxu2 }
 0x112   : > { %v2514_v25 = vpop.f32.mrf.mxu3 }
 0x113   : > { %v1230_v27 = vpop.f32.mrf.mxu1 }
 0x114   : > { %v1590_v29 = vpop.f32.mrf.mxu0  ;;  %v1250_v32 = vadd.f32 %v1230_v27, %v1056_v31  ;;  %v894_v31 = vadd.f32 %v2488_v9, %v692_v3 }
 0x119   : > { %v1313_v33 = vpop.f32.mrf.mxu2 }
 0x11a   : > { %v1396_v34 = vpop.f32.mrf.mxu3  ;;  %v1333_v36 = vadd.f32 %v1313_v33, %v1250_v32  ;;  %v1059_v32 = vadd.f32 %v2480_v4, %v976_v26 }
 0x11b   : > { %v1232_v37 = vpop.f32.mrf.mxu1 }
 0x11c   : > { %v1416_v39 = vadd.f32 %v1396_v34, %v1333_v36  ;;  %v1592_v41 = vpop.f32.mrf.mxu0  ;;  %v1251_v47 = vadd.f32 %v1232_v37, %v1057_v44  ;;  %v977_v36 = vadd.f32 %v2490_v10, %v894_v31 }
 0x11e   : > { %v1610_v43 = vadd.f32 %v1590_v29, %v1416_v39  ;;  %v1060_v42 = vadd.f32 %v2486_v8, %v977_v36 }
 0x120   : > { %v1622_v46 = vadd.f32 %v2521_v40, %v1610_v43 }
 0x121   : > { %v1315_v48 = vpop.f32.mrf.mxu2 }
 0x122   : > { %v1398_v49 = vpop.f32.mrf.mxu3  ;;  %v1630_v55 = vmax.f32 %v1622_v46, 0.0  ;;  %v1334_v45 = vadd.f32 %v1315_v48, %v1251_v47 }
 0x123   : > { %v1235_v56 = vpop.f32.mrf.mxu1 }
 0x124   : > { %v1638_v58 = vpack.c.bf16 %v1630_v55, %v1630_v55  ;;  %v1417_v59 = vadd.f32 %v1398_v49, %v1334_v45  ;;  %v1595_v60 = vpop.f32.mrf.mxu0  ;;  %v1252_v2 = vadd.f32 %v1235_v56, %v1058_v63 }
 0x126   : > { %1647 = vst.msk [vmem:[%s2527_s6] sm:$0xf] %vm1646_vm5, %v1638_v58  ;;  %v1611_v62 = vadd.f32 %v1592_v41, %v1417_v59  ;;  %v895_v41 = vadd.f32 %v2496_v13, %v694_v38  ;;  %v697_v13 = vadd.f32 %v2500_v15, %v2470_v50 }
 0x128   : > { %v1623_v1 = vadd.f32 %v2521_v40, %v1611_v62  ;;  %v978_v48 = vadd.f32 %v2498_v14, %v895_v41  ;;  %v896_v45 = vadd.f32 %v2504_v17, %v697_v13  ;;  %v699_v17 = vadd.f32 %v2508_v20, %v2476_v54 }
 0x129   : > { %v1318_v21 = vpop.f32.mrf.mxu2 }
 0x12a   : > { %v1401_v23 = vpop.f32.mrf.mxu3  ;;  %v1631_v27 = vmax.f32 %v1623_v1, 0.0  ;;  %v1335_v28 = vadd.f32 %v1318_v21, %v1252_v2  ;;  %v1061_v56 = vadd.f32 %v2494_v12, %v978_v48  ;;  %v979_v61 = vadd.f32 %v2506_v19, %v896_v45 }
 0x12b   : > { %v1237_v51 = vpop.f32.mrf.mxu1  ;;  %v897_v2 = vadd.f32 %v2512_v24, %v699_v17 }
 0x12c   : > { %v1639_v5 = vpack.c.bf16 %v1631_v27, %v1631_v27  ;;  %v1418_v29 = vadd.f32 %v1401_v23, %v1335_v28  ;;  %v1597_v30 = vpop.f32.mrf.mxu0  ;;  %v1253_v6 = vadd.f32 %v1237_v51, %v1059_v32  ;;  %v1062_v21 = vadd.f32 %v2502_v16, %v979_v61 }
 0x12d   : > { %v980_v28 = vadd.f32 %v2514_v25, %v897_v2 }
 0x12e   : > { %1648 = vst.msk [vmem:[%s2527_s6 + $0x4] sm:$0xf] %vm1646_vm5, %v1639_v5  ;;  %v1612_v0 = vadd.f32 %v1595_v60, %v1418_v29 }
 0x12f   : > { %v1063_v16 = vadd.f32 %v2510_v22, %v980_v28 }
 0x130   : > { %v1624_v33 = vadd.f32 %v2521_v40, %v1612_v0 }
 0x131   : > { %v1320_v34 = vpop.f32.mrf.mxu2 }
 0x132   : > { %v1403_v35 = vpop.f32.mrf.mxu3  ;;  %v1632_v37 = vmax.f32 %v1624_v33, 0.0  ;;  %v1336_v18 = vadd.f32 %v1320_v34, %v1253_v6 }
 0x133   : > { %v1240_v7 = vpop.f32.mrf.mxu1 }
 0x134   : > { %v1640_v9 = vpack.c.bf16 %v1632_v37, %v1632_v37  ;;  %v1419_v39 = vadd.f32 %v1403_v35, %v1336_v18  ;;  %v1600_v43 = vpop.f32.mrf.mxu0  ;;  %v1254_v10 = vadd.f32 %v1240_v7, %v1060_v42 }
 0x136   : > { %1649 = vst.msk [vmem:[%s2527_s6 + $0x8] sm:$0xf] %vm1646_vm5, %v1640_v9  ;;  %v1613_v4 = vadd.f32 %v1597_v30, %v1419_v39 }
 0x138   : > { %v1625_v44 = vadd.f32 %v2521_v40, %v1613_v4 }
 0x139   : > { %v1323_v46 = vpop.f32.mrf.mxu2 }
 0x13a   : > { %v1406_v47 = vpop.f32.mrf.mxu3  ;;  %v1633_v49 = vmax.f32 %v1625_v44, 0.0  ;;  %v1337_v53 = vadd.f32 %v1323_v46, %v1254_v10 }
 0x13b   : > { %v1242_v11 = vpop.f32.mrf.mxu1 }
 0x13c   : > { %v1641_v52 = vpack.c.bf16 %v1633_v49, %v1633_v49  ;;  %v1420_v55 = vadd.f32 %v1406_v47, %v1337_v53  ;;  %v1255_v58 = vadd.f32 %v1242_v11, %v1061_v56  ;;  %v1602_v14 = vpop.f32.mrf.mxu0 }
 0x13e   : > { %1650 = vst.msk [vmem:[%s2527_s6 + $0xc] sm:$0xf] %vm1646_vm5, %v1641_v52  ;;  %v1614_v8 = vadd.f32 %v1600_v43, %v1420_v55 }
 0x140   : > { %v1626_v57 = vadd.f32 %v2521_v40, %v1614_v8 }
 0x141   : > { %v1325_v59 = vpop.f32.mrf.mxu2 }
 0x142   : > { %v1408_v60 = vpop.f32.mrf.mxu3  ;;  %v1634_v62 = vmax.f32 %v1626_v57, 0.0  ;;  %v1338_v50 = vadd.f32 %v1325_v59, %v1255_v58 }
 0x143   : > { %v1245_v15 = vpop.f32.mrf.mxu1 }
 0x144   : > { %v1642_v63 = vpack.c.bf16 %v1634_v62, %v1634_v62  ;;  %v1421_v1 = vadd.f32 %v1408_v60, %v1338_v50  ;;  %v1256_v26 = vadd.f32 %v1245_v15, %v1062_v21  ;;  %v1605_v54 = vpop.f32.mrf.mxu0 }
 0x146   : > { %1651 = vst.msk [vmem:[%s2527_s6 + $0x10] sm:$0xf] %vm1646_vm5, %v1642_v63  ;;  %v1615_v12 = vadd.f32 %v1602_v14, %v1421_v1 }
 0x148   : > { %v1627_v23 = vadd.f32 %v2521_v40, %v1615_v12 }
 0x149   : > { %v1328_v19 = vpop.f32.mrf.mxu2 }
 0x14a   : > { %v1411_v27 = vpop.f32.mrf.mxu3  ;;  %v1635_v51 = vmax.f32 %v1627_v23, 0.0  ;;  %v1339_v3 = vadd.f32 %v1328_v19, %v1256_v26 }
 0x14b   : > { %v1247_v29 = vpop.f32.mrf.mxu1 }
 0x14c   : > { %v1643_v20 = vpack.c.bf16 %v1635_v51, %v1635_v51  ;;  %v1422_v5 = vadd.f32 %v1411_v27, %v1339_v3  ;;  %v1257_v31 = vadd.f32 %v1247_v29, %v1063_v16  ;;  %v1607_v35 = vpop.f32.mrf.mxu0 }
 0x14e   : > { %1652 = vst.msk [vmem:[%s2527_s6 + $0x14] sm:$0xf] %vm1646_vm5, %v1643_v20  ;;  %v1616_v24 = vadd.f32 %v1605_v54, %v1422_v5 }
 0x150   : > { %v1628_v30 = vadd.f32 %v2521_v40, %v1616_v24 }
 0x151   : > { %v1330_v0 = vpop.f32.mrf.mxu2 }
 0x152   : > { %v1636_v32 = vmax.f32 %v1628_v30, 0.0  ;;  %v1340_v33 = vadd.f32 %v1330_v0, %v1257_v31  ;;  %v1413_v25 = vpop.f32.mrf.mxu3 }
 0x154   : > { %v1644_v6 = vpack.c.bf16 %v1636_v32, %v1636_v32  ;;  %v1423_v34 = vadd.f32 %v1413_v25, %v1340_v33 }
 0x156   : > { %1653 = vst.msk [vmem:[%s2527_s6 + $0x18] sm:$0xf] %vm1646_vm5, %v1644_v6  ;;  %v1617_v36 = vadd.f32 %v1607_v35, %v1423_v34 }
 0x158   : > { %v1629_v37 = vadd.f32 %v2521_v40, %v1617_v36 }
 0x15a   : > { %v1637_v18 = vmax.f32 %v1629_v37, 0.0 }
 0x15c   : > { %v1645_v7 = vpack.c.bf16 %v1637_v18, %v1637_v18 }
 0x15e   : > { %1654 = vst.msk [vmem:[%s2527_s6 + $0x1c] sm:$0xf] %vm1646_vm5, %v1645_v7 }
 0x15f PF: > { %s13_s16 = sadd.s32 1, %s2100_s16   ;;  %s2597_s12 = smov %s2088_s13 }
 0x160   : > { %p10_p10 = scmp.ge.s32.totalorder %s13_s16, 4   ;;  %s2598_s13 = smov %s2157_s20 }
 0x161   : > { %s2599_s14 = smov %s2096_s15  ;;  %s2600_s15 = smov %s2602_s17 }
 0x162   :  { %12 = sbr.rel (!%p10_p10) target bundleno = 3 (0x3), region = 127 }

</bundles_post_ra>
